<compile_context>
chip_gen: v7x
topology: tpu7x:2x2x1
jax: 0.10.0
libtpu: 0.0.40
codegen_flags: <defaults>
</compile_context>

<pallas_src>
import numpy as np
import jax
import jax.numpy as jnp
from jax.experimental import pallas as pl
from jax.experimental.pallas import tpu as pltpu

NX, NY, NCH = 128, 128, 32   # fixed by PointPillarsScatter.__init__
S = NX * NY                  # flattened spatial extent (16384)


def _scatter_kernel_multi(flag_ref, feat_ref, key_ref, out_ref, acc_ref):
    # flag_ref: (B*n_tiles*n_k,) int32 in SMEM (scalar prefetch)
    # feat_ref: (C, PC)         feature chunk for PC pillars
    # key_ref : (PC, 1) int32   fused key = batch*S + x*NY + y per pillar
    # out_ref : (1, C, TS)      output spatial tile for this batch
    # acc_ref : (C, TS) f32     accumulator, resident across the k axis
    b = pl.program_id(0)
    t = pl.program_id(1)
    k = pl.program_id(2)
    n_tiles = pl.num_programs(1)
    n_k = pl.num_programs(2)

    @pl.when(k == 0)
    def _():
        acc_ref[...] = jnp.zeros_like(acc_ref)

    flag = flag_ref[(b * n_tiles + t) * n_k + k]

    @pl.when(flag != 0)
    def _():
        PC = key_ref.shape[0]
        TS = out_ref.shape[2]
        base = b * S + t * TS                                  # scalar
        col_iota = jax.lax.broadcasted_iota(jnp.int32, (PC, TS), 1)
        sel = (key_ref[...] - base) == col_iota                # (PC, TS)
        onehot = sel.astype(feat_ref.dtype)                    # 0/1, exact
        acc_ref[...] += jnp.dot(feat_ref[...], onehot,
                                preferred_element_type=jnp.float32)

    @pl.when(k == n_k - 1)
    def _():
        out_ref[0] = acc_ref[...].astype(out_ref.dtype)


def _scatter_kernel_single(flag_ref, feat_ref, key_ref, out_ref):
    # Single pillar-chunk specialization: no accumulator round-trip.
    b = pl.program_id(0)
    t = pl.program_id(1)
    n_tiles = pl.num_programs(1)
    TS = out_ref.shape[2]

    flag = flag_ref[b * n_tiles + t]

    @pl.when(flag != 0)
    def _():
        PC = key_ref.shape[0]
        base = b * S + t * TS
        col_iota = jax.lax.broadcasted_iota(jnp.int32, (PC, TS), 1)
        sel = (key_ref[...] - base) == col_iota
        onehot = sel.astype(feat_ref.dtype)
        out_ref[0] = jnp.dot(feat_ref[...], onehot,
                             preferred_element_type=jnp.float32
                             ).astype(out_ref.dtype)

    @pl.when(flag == 0)
    def _():
        out_ref[...] = jnp.zeros(out_ref.shape, out_ref.dtype)


def _default_tiling():
    """Generation-aware defaults: (tile_s, p_chunk, vmem_capacity_bytes)."""
    try:
        cap = int(pltpu.get_tpu_info().vmem_capacity_bytes)
    except Exception:
        cap = 64 << 20                       # conservative (v7x-sized) fallback
    if cap >= (96 << 20):                    # v5e / v6e: 128 MiB VMEM
        return 4096, 512, cap
    return 2048, 512, cap                    # v7x: 64 MiB VMEM


def point_pillars_scatter(features, coords, batch_size, *,
                          tile_s=None, p_chunk=None):
    """features: (NCH, P) float; coords: (P, 3) int (batch, x, y)."""
    C, P = features.shape
    assert C == NCH

    def_ts, def_pc, vmem_cap = _default_tiling()
    if tile_s is None:
        tile_s = def_ts
    if p_chunk is None:
        p_chunk = def_pc
    assert S % tile_s == 0 and tile_s % 128 == 0

    # Fused (batch, spatial) key.  Invalid coords (padding, wrong batch id,
    # out-of-range x/y) are masked to -1 so they never scatter anywhere.
    b_id = coords[:, 0].astype(jnp.int32)
    x = coords[:, 1].astype(jnp.int32)
    y = coords[:, 2].astype(jnp.int32)
    valid = ((b_id >= 0) & (b_id < batch_size) &
             (x >= 0) & (x < NX) & (y >= 0) & (y < NY))
    key = jnp.where(valid, b_id * S + x * NY + y, -1)          # (P,)

    # Pillar-chunk size: multiple of 256 (MXU K), never larger than needed.
    p_chunk = max(256, ((p_chunk + 255) // 256) * 256)
    pc = min(p_chunk, ((P + 255) // 256) * 256)
    P_pad = ((P + pc - 1) // pc) * pc
    if P_pad != P:
        features = jnp.pad(features, ((0, 0), (0, P_pad - P)))
        key = jnp.pad(key, (0, P_pad - P), constant_values=-1)

    n_tiles = S // tile_s
    n_k = P_pad // pc

    # Per-(batch, spatial-tile, pillar-chunk) occupancy flags, computed in
    # plain XLA and scalar-prefetched into SMEM.  key // tile_s is exactly
    # the (b * n_tiles + t) bin index for valid keys.
    bins = jnp.where(key >= 0, key // tile_s, 0)
    chunk_id = jnp.arange(P_pad, dtype=jnp.int32) // pc
    flat_bin = bins * n_k + chunk_id
    counts = jnp.zeros((batch_size * n_tiles * n_k,), jnp.int32)
    counts = counts.at[flat_bin].add((key >= 0).astype(jnp.int32))
    flags = (counts > 0).astype(jnp.int32)                     # (B*n_tiles*n_k,)

    key2d = key.reshape(P_pad, 1)
    fsz = jnp.dtype(features.dtype).itemsize

    # Per-step VMEM budget: double-buffered blocks + f32 accumulator + THREE
    # (pc, tile_s)-sized temporaries (i32 iota, compare mask, one-hot).
    vmem_est = (2 * C * pc * fsz            # feature blocks
                + 2 * pc * 128 * 4          # key blocks (lane-padded)
                + 2 * C * tile_s * fsz      # output blocks
                + C * tile_s * 4            # f32 accumulator scratch
                + 3 * pc * tile_s * 4)      # iota / mask / one-hot temps
    vmem_limit = max(24 << 20,
                     min(int(vmem_est * 3 // 2), int(vmem_cap * 7 // 10)))

    cost = pl.CostEstimate(
        flops=2 * C * P_pad * S * batch_size,
        transcendentals=0,
        bytes_accessed=int(
            batch_size * C * S * fsz                                  # output
            + batch_size * n_tiles * (C * P_pad * fsz + P_pad * 4)    # re-reads
            + batch_size * n_tiles * n_k * 4))                        # flags

    cparams = dict(vmem_limit_bytes=vmem_limit)

    if n_k == 1:
        out = pl.pallas_call(
            _scatter_kernel_single,
            out_shape=jax.ShapeDtypeStruct((batch_size, C, S), features.dtype),
            grid_spec=pltpu.PrefetchScalarGridSpec(
                num_scalar_prefetch=1,
                grid=(batch_size, n_tiles),
                in_specs=[
                    pl.BlockSpec((C, pc), lambda b, t, flg: (0, 0)),
                    pl.BlockSpec((pc, 1), lambda b, t, flg: (0, 0)),
                ],
                out_specs=pl.BlockSpec((1, C, tile_s),
                                       lambda b, t, flg: (b, 0, t)),
            ),
            compiler_params=pltpu.CompilerParams(
                dimension_semantics=("parallel", "parallel"), **cparams),
            cost_estimate=cost,
        )(flags, features, key2d)
    else:
        out = pl.pallas_call(
            _scatter_kernel_multi,
            out_shape=jax.ShapeDtypeStruct((batch_size, C, S), features.dtype),
            grid_spec=pltpu.PrefetchScalarGridSpec(
                num_scalar_prefetch=1,
                grid=(batch_size, n_tiles, n_k),
                in_specs=[
                    pl.BlockSpec((C, pc), lambda b, t, k, flg: (0, k)),
                    pl.BlockSpec((pc, 1), lambda b, t, k, flg: (k, 0)),
                ],
                out_specs=pl.BlockSpec((1, C, tile_s),
                                       lambda b, t, k, flg: (b, 0, t)),
                scratch_shapes=[pltpu.VMEM((C, tile_s), jnp.float32)],
            ),
            compiler_params=pltpu.CompilerParams(
                dimension_semantics=("parallel", "parallel", "arbitrary"),
                **cparams),
            cost_estimate=cost,
        )(flags, features, key2d)

    # (B, C, S) -> (B, C, NX, NY): pure reshape, no transpose (NCHW layout).
    return out.reshape(batch_size, C, NX, NY)


def reference_np(features, coords, batch_size):
    """NumPy transcription of the PyTorch forward (assignment scatter)."""
    features = np.asarray(features)
    coords = np.asarray(coords)
    out = np.zeros((batch_size, NCH, NX, NY), dtype=features.dtype)
    for b in range(batch_size):
        m = coords[:, 0] == b
        c = coords[m]
        out[b][:, c[:, 1], c[:, 2]] = features[:, m]
    return out


if __name__ == "__main__":
    batch_size = 2
    root = jax.random.PRNGKey(0)

    def make_inputs(P, key):
        kf, kc = jax.random.split(key)
        # Unique flat coordinates so assignment == one-hot-sum semantics.
        flat_idx = jax.random.permutation(kc, NX * NY)[:P]
        xs = (flat_idx // NY).astype(jnp.int32)
        ys = (flat_idx % NY).astype(jnp.int32)
        bids = (jnp.arange(P, dtype=jnp.int32) // max(P // batch_size, 1))
        coords = jnp.stack([bids, xs, ys], axis=1)            # (P, 3) int32
        feats = jax.random.normal(kf, (NCH, P), dtype=jnp.float32)
        return feats, coords

    # Small pillar count: exercises the single-chunk (no accumulator) kernel.
    f1, c1 = make_inputs(256, jax.random.fold_in(root, 1))
    o1 = jax.block_until_ready(point_pillars_scatter(f1, c1, batch_size))
    assert o1.shape == (batch_size, NCH, NX, NY)
    np.testing.assert_allclose(np.asarray(o1), reference_np(f1, c1, batch_size),
                               rtol=1e-6, atol=1e-6)

    # Larger pillar count: exercises the multi-chunk accumulator +
    # occupancy-skip path.
    f2, c2 = make_inputs(640, jax.random.fold_in(root, 2))
    o2 = jax.block_until_ready(point_pillars_scatter(f2, c2, batch_size))
    np.testing.assert_allclose(np.asarray(o2), reference_np(f2, c2, batch_size),
                               rtol=1e-6, atol=1e-6)

    print("KERNEL_OK")
</pallas_src>

<mosaic_0001>
module attributes {stable_mosaic.version = 11 : i64} {
  func.func @_scatter_kernel_single(%arg0: i32, %arg1: i32, %arg2: memref<16xi32, #tpu.memory_space<smem>>, %arg3: memref<32x256xf32, #tpu.memory_space<vmem>>, %arg4: memref<256x1xi32, #tpu.memory_space<vmem>>, %arg5: memref<1x32x2048xf32, #tpu.memory_space<vmem>>) attributes {dimension_semantics = [#tpu.dimension_semantics<parallel>, #tpu.dimension_semantics<parallel>], iteration_bounds = array<i64: 2, 8>, scalar_prefetch = 1 : i64, scratch_operands = 0 : i64, tpu.core_type = #tpu.core_type<tc>, window_params = [{pipeline_mode = #tpu.pipeline_mode<synchronous>, transform_indices = @transform_0, window_bounds = array<i64: 32, 256>}, {pipeline_mode = #tpu.pipeline_mode<synchronous>, transform_indices = @transform_1, window_bounds = array<i64: 256, 1>}, {transform_indices = @transform_2, window_bounds = array<i64: 1, 32, 2048>}]} {
    %c8_i32 = arith.constant 8 : i32
    %0 = arith.muli %arg0, %c8_i32 : i32
    %1 = arith.addi %0, %arg1 : i32
    %2 = arith.index_cast %1 : i32 to index
    %3 = memref.load %arg2[%2] : memref<16xi32, #tpu.memory_space<smem>>
    %c0_i32 = arith.constant 0 : i32
    %4 = arith.cmpi ne, %3, %c0_i32 : i32
    %5 = arith.extui %4 : i1 to i32
    %c0_i32_0 = arith.constant 0 : i32
    %6 = arith.cmpi ne, %5, %c0_i32_0 : i32
    scf.if %6 {
      %c16384_i32 = arith.constant 16384 : i32
      %10 = arith.muli %arg0, %c16384_i32 : i32
      %c2048_i32 = arith.constant 2048 : i32
      %11 = arith.muli %arg1, %c2048_i32 : i32
      %12 = arith.addi %10, %11 : i32
      %13 = tpu.iota {dimensions = array<i32: 1>} : vector<256x2048xi32>
      %c0 = arith.constant 0 : index
      %c0_3 = arith.constant 0 : index
      %14 = vector.load %arg4[%c0, %c0_3] : memref<256x1xi32, #tpu.memory_space<vmem>>, vector<256x1xi32>
      %15 = vector.broadcast %12 : i32 to vector<256x1xi32>
      %16 = arith.subi %14, %15 : vector<256x1xi32>
      %17 = vector.broadcast %16 : vector<256x1xi32> to vector<256x2048xi32>
      %18 = arith.cmpi eq, %17, %13 : vector<256x2048xi32>
      %19 = arith.extui %18 : vector<256x2048xi1> to vector<256x2048xi32>
      %20 = arith.sitofp %19 : vector<256x2048xi32> to vector<256x2048xf32>
      %c0_4 = arith.constant 0 : index
      %c0_5 = arith.constant 0 : index
      %21 = vector.load %arg3[%c0_4, %c0_5] : memref<32x256xf32, #tpu.memory_space<vmem>>, vector<32x256xf32>
      %cst = arith.constant dense<0.000000e+00> : vector<32x2048xf32>
      %22 = tpu.matmul %21, %20, %cst {dimension_numbers = #tpu.dot_dimension_numbers<[1], [0], [0], [1], [0, 0, 1, 1], [], []>} : vector<32x256xf32>, vector<256x2048xf32>, vector<32x2048xf32> -> vector<32x2048xf32>
      %c0_6 = arith.constant 0 : index
      %c0_7 = arith.constant 0 : index
      %c0_8 = arith.constant 0 : index
      %23 = vector.load %arg5[%c0_6, %c0_7, %c0_8] : memref<1x32x2048xf32, #tpu.memory_space<vmem>>, vector<1x32x2048xf32>
      %24 = vector.shape_cast %23 : vector<1x32x2048xf32> to vector<32x2048xf32>
      %25 = vector.shape_cast %22 : vector<32x2048xf32> to vector<1x32x2048xf32>
      tpu.vector_store %arg5[%c0_6, %c0_7, %c0_8], %25 {strides = array<i32>} : memref<1x32x2048xf32, #tpu.memory_space<vmem>>, vector<1x32x2048xf32>,
    } else {
    }
    %c0_i32_1 = arith.constant 0 : i32
    %7 = arith.cmpi eq, %3, %c0_i32_1 : i32
    %8 = arith.extui %7 : i1 to i32
    %c0_i32_2 = arith.constant 0 : i32
    %9 = arith.cmpi ne, %8, %c0_i32_2 : i32
    scf.if %9 {
      %cst = arith.constant 0.000000e+00 : f32
      %10 = vector.broadcast %cst : f32 to vector<1x32x2048xf32>
      %c0 = arith.constant 0 : index
      %c0_3 = arith.constant 0 : index
      %c0_4 = arith.constant 0 : index
      %11 = vector.load %arg5[%c0, %c0_3, %c0_4] : memref<1x32x2048xf32, #tpu.memory_space<vmem>>, vector<1x32x2048xf32>
      tpu.vector_store %arg5[%c0, %c0_3, %c0_4], %10 {strides = array<i32>} : memref<1x32x2048xf32, #tpu.memory_space<vmem>>, vector<1x32x2048xf32>,
    } else {
    }
    return
  }
  func.func @transform_0(%arg0: i32, %arg1: i32, %arg2: memref<16xi32, #tpu.memory_space<smem>>) -> (i32, i32) {
    %c0_i32 = arith.constant 0 : i32
    %c0_i32_0 = arith.constant 0 : i32
    %c0_i32_1 = arith.constant 0 : i32
    return %c0_i32, %c0_i32_0 : i32, i32
  }
  func.func @transform_1(%arg0: i32, %arg1: i32, %arg2: memref<16xi32, #tpu.memory_space<smem>>) -> (i32, i32) {
    %c0_i32 = arith.constant 0 : i32
    %c0_i32_0 = arith.constant 0 : i32
    %c0_i32_1 = arith.constant 0 : i32
    return %c0_i32, %c0_i32_0 : i32, i32
  }
  func.func @transform_2(%arg0: i32, %arg1: i32, %arg2: memref<16xi32, #tpu.memory_space<smem>>) -> (i32, i32, i32) {
    %c0_i32 = arith.constant 0 : i32
    %c0_i32_0 = arith.constant 0 : i32
    return %arg0, %c0_i32, %arg1 : i32, i32, i32
  }
}

</mosaic_0001>

<bundles_post_ra>
// kernel: tpu_custom_call.1
= control target key start
LH: loop header
LB: loop body
LE: loop exit
PB: predicated region body
PF: predicated region fallthrough
CT: control target
= control target key end

     0   :  { %s6766_s0 = inlined_call_operand.hbm [shape: s32[16], index: 0, kind: input, shape index: {}]   ;;  %s6767_s1 = inlined_call_operand.hbm [shape: f32[32,256], index: 1, kind: input, shape index: {}]   ;;  %s6768_s2 = inlined_call_operand.vmem [shape: s32[256,1], index: 2, kind: input, shape index: {}]   ;;  %s6769_s3 = inlined_call_operand.hbm [shape: f32[2,32,16384], index: 3, kind: output, shape index: {}]  }
   0x1   :  { %s4480_s14 = scalar_lea.hbm %s6766_s0, 16 }
   0x2   :  { %p4481_p0 = scmp.ne.s32.totalorder %s6766_s0, %s4480_s14  ;;  %p4484_p1 = scmp.lt.u32.totalorder %s4480_s14, %s6766_s0 }
   0x4   :  { %p4486_p2 = pnand %p4484_p1, %p4481_p0 }
   0x6   :  { %4489 = shalt.err (!%p4486_p2)  }
   0x7   :  { %s4620_s19 = smov [#allocation3]  }
   0x8   :  { %9 = dma.hbm_to_smem %s6766_s0, 16, %s4620_s19, [#allocation2] }
   0x9   :  { %4578 = dma.done.wait [#allocation2], 16 }
   0xa   :  { %4579 = vsyncadd [#allocation2], 4294967280 }
   0xb   :  { %11 = sfence }
   0xc   :  { %12 = vsyncpa [#allocation5], 0 }
   0xd   :  { %13 = vsyncpa [#allocation6], 0 }
   0xe   :  { %15 = vsyncpa [#allocation6 + $0x1], 0  ;;  %s4663_s22 = smov 0   ;;  %s4665_s23 = smov 0  }
   0xf   :  { %s4667_s24 = smov 0   ;;  %s4669_s25 = smov 0  }
  0x10   :  { %s4671_s26 = smov 0   ;;  %s4673_s27 = smov 0  }
  0x11   :  { %s4675_s28 = smov 0   ;;  %s4677_s0 = smov 0  }
  0x12 LB: > { %s2825_s29 = sadd.s32 4294967295, %s4618_s0   ;;  %s2826_s30 = sadd.s32 4294967294, %s4618_s0   ;;  %s4618_s0 = sphi %s4677_s0, %s21_s0   ;;  %s4614_s28 = sphi %s4675_s28, %s6789_s28   ;;  %s4610_s27 = sphi %s4673_s27, %s6788_s27   ;;  %s4606_s26 = sphi %s4671_s26, %s6787_s26   ;;  %s4602_s25 = sphi %s4669_s25, %s6786_s25   ;;  %s4598_s24 = sphi %s4667_s24, %s6785_s24   ;;  %s4594_s23 = sphi %s4665_s23, %s6784_s23   ;;  %s4590_s22 = sphi %s4663_s22, %s6783_s22  }
  0x13   : > { %s30_s4 = sadd.s32 1, %s4610_s27  ;;  %s33_s5 = sadd.s32 1, %s4614_s28 }
  0x14   : > { %p31_p3 = scmp.ge.s32.totalorder %s30_s4, 8  ;;  %s84_s6 = sadd.s32 1, %s4598_s24 }
  0x15   : > { %p94_p4 = scmp.ne.s32.totalorder %s4598_s24, %s4594_s23  ;;  %p95_p5 = scmp.eq.s32.totalorder %s2825_s29, 15 }
  0x16   : > { %s6791_s4 = smov (%p31_p3, %s30_s4), 0  ;;  %s6793_s5 = smov (!%p31_p3, %s33_s5), %s4614_s28 }
  0x17   : > { %s80_s7 = ssub.s32 %s4610_s27, %s6791_s4  ;;  %p4715_p6 = por %p95_p5, %p94_p4 }
  0x18   : > { %p35_p7 = scmp.ge.s32.totalorder %s6793_s5, 2  ;;  %p100_p8 = scmp.ne.s32.totalorder %s4594_s23, %s4590_s22 }
  0x19   : > { %s6774_s8 = scalar_select %p4715_p6, 1, 0 }
  0x1a   : > { %p101_p9 = scmp.eq.s32.totalorder %s2826_s30, 15  ;;  %p2827_p10 = scmp.ge.s32.totalorder %s4618_s0, 1 }
  0x1b   : > { %s6795_s5 = smov (%p35_p7, %s6793_s5), 0  ;;  %p108_p12 = scmp.lt.s32.totalorder %s4618_s0, 17 }
  0x1c   : > { %p4724_p11 = por %p101_p9, %p100_p8  ;;  %s79_s10 = ssub.s32 %s4614_s28, %s6795_s5 }
  0x1d   : > { %s81_s11 = sor.u32 %s80_s7, %s79_s10  ;;  %p4731_p13 = pnand %p2827_p10, %p108_p12 }
  0x1e   : > { %s6775_s9 = scalar_select %p4724_p11, 1, 0 }
  0x1f   : > { %s6776_s12 = scalar_select %p4731_p13, 1, 0 }
  0x20   : > { %p82_p0 = scmp.eq.s32.totalorder %s81_s11, 0  ;;  %p4735_p1 = scmp.eq.s32.totalorder %s2825_s29, 0 }
  0x21   : > { %p4385_p2 = pneg %p4731_p13  ;;  %s4621_s15 = smov [#allocation4]  }
  0x22   : > { %s6777_s13 = scalar_select %p4735_p1, 1, 0 }
  0x23   : > { %s4742_s14 = scalar_select %p82_p0, %s4598_s24, %s84_s6  }
  0x24   : > { %s120_s16 = sshll.u32 %s4621_s15, 4  ;;  %p4746_p3 = pnand %p4735_p1, %p4385_p2  ;;  %s121_s16 = int_to_ptr.vmem [resolvable:$true] %s120_s16 }
  0x25   : > { %s4490_s20 = scalar_lea.hbm %s6767_s1, 1024 }
  0x26   : > { %p4491_p4 = scmp.ne.s32.totalorder %s6767_s1, %s4490_s20  ;;  %p4492_p5 = pneg %p4746_p3 }
  0x27   : > { %p4497_p9 = scmp.lt.u32.totalorder %s4490_s20, %s6767_s1 }
  0x28   : > { %p4493_p7 = pnand %p4492_p5, %p4491_p4 }
  0x2a   : > { %p4494_p8 = pneg %p4493_p7 }
  0x2c   : > { %p4499_p10 = pnand %p4497_p9, %p4494_p8 }
  0x2e   : > { %4502 = shalt.err (!%p4499_p10)
}
  0x2f   : > { %s4503_s7 = scalar_lea.vmem %s121_s16, 1024  ;;  %p4511_p11 = scmp.lt.s32.totalorder %s121_s16, %s121_s16 }
  0x30   : > { %p4504_p12 = scmp.ne.s32.totalorder %s121_s16, %s4503_s7  ;;  %p4512_p6 = scmp.lt.s32.totalorder %s4503_s7, %s4503_s7 }
  0x32   : > { %p4506_p0 = pnand %p4504_p12, %p4492_p5  ;;  %p4513_p1 = por %p4512_p6, %p4511_p11 }
  0x34   : > { %p4507_p2 = pneg %p4506_p0 }
  0x36   : > { %p4514_p13 = pnand %p4513_p1, %p4507_p2 }
  0x38   : > { %4517 = shalt.err (!%p4514_p13)
}
  0x39   : > { %s4622_s10 = smov 256   ;;  %s4623_s11 = smov 16  }
  0x3a   : > { %4388 = dma.hbm_to_vmem [thread:$0]  (!%p4746_p3), %s6767_s1, 1024, %s121_s16, [#allocation5], %s4622_s10, %s4622_s10, %s4623_s11  }
  0x3b   : > { %p6779_p4 = scmp.ne.s32.totalorder %s6776_s12, 0 }
  0x3c   : > { %p6780_p7 = scmp.ne.s32.totalorder (!%p6779_p4), %s6777_s13, 0 }
  0x3d   : > { %139 = sbr.rel (%p6779_p4) target bundleno = 764 (0x2fc), region = 28 }
  0x44   : > { %4581 = dma.done.wait (%p6780_p7), [#allocation5], 1024  }
  0x45   : > { %4583 = vsyncadd (%p6780_p7), [#allocation5], 4294966272  ;;  %s2832_s19 = sshll.u32 %s4606_s26, 3  ;;  %s153_s20 = sand.u32 1, %s4594_s23  }
  0x46   : > { %s158_s17 = sadd.s32 %s4602_s25, %s2832_s19  ;;  %s2831_s21 = sshll.u32 %s153_s20, 9 }
  0x47   : > { %s4777_s29 = sld [smem:[#allocation3 + %s158_s17]]  ;;  %s4779_s16 = scalar_lea.vmem [#allocation7], %s2831_s21 }
  0x4d   : > { %p2833_p6 = scmp.eq.s32.totalorder %s4777_s29, 0 }
  0x4e   : > { %s2834_s12 = sshll.u32 (!%p2833_p6), %s4606_s26, 14  ;;  %s2835_s13 = sshll.u32 (!%p2833_p6), %s4602_s25, 11  ;;  %v186_v0 = vld [vmem:[%s6768_s2 + $0x10] sm:$0xff] (!%p2833_p6)  ;;  %v184_v1 = vld [vmem:[%s6768_s2] sm:$0xff] (!%p2833_p6)  ;;  %v4624_v2 = vmov (!%p2833_p6), 0   ;;  %v187_v4 = vld [vmem:[%s6768_s2 + $0x18] sm:$0xff] (!%p2833_p6) }
  0x4f   : > { %163 = sbr.rel (%p2833_p6) target bundleno = 701 (0x2bd), region = 36  ;;  %4471 = vset.pattern.permute.xlu1 (!%p2833_p6), %v4624_v2  ;;  %4470 = vset.pattern.permute.xlu0 (!%p2833_p6), %v4624_v2  ;;  %s166_s11 = sadd.s32 (!%p2833_p6), %s2835_s13, %s2834_s12  ;;  %v185_v5 = vld [vmem:[%s6768_s2 + $0x8] sm:$0xff] (!%p2833_p6)  ;;  %v188_v11 = vld [vmem:[%s6768_s2 + $0x20] sm:$0xff] (!%p2833_p6)  ;;  %v191_v14 = vld [vmem:[%s6768_s2 + $0x38] sm:$0xff] (!%p2833_p6) }
  0x50   : > { %v4790_v3 = vstv (!%p2833_p6), %s166_s11  ;;  %v189_v10 = vld [vmem:[%s6768_s2 + $0x28] sm:$0xff] (!%p2833_p6)  ;;  %v190_v15 = vld [vmem:[%s6768_s2 + $0x30] sm:$0xff] (!%p2833_p6)  ;;  %v192_v19 = vld [vmem:[%s6768_s2 + $0x40] sm:$0xff] (!%p2833_p6) }
  0x51   : > { %v219_v6 = vsub.s32 (!%p2833_p6), %v186_v0, %v4790_v3  ;;  %v217_v7 = vsub.s32 (!%p2833_p6), %v184_v1, %v4790_v3  ;;  %v220_v8 = vsub.s32 (!%p2833_p6), %v187_v4, %v4790_v3  ;;  %v218_v9 = vsub.s32 (!%p2833_p6), %v185_v5, %v4790_v3  ;;  %v193_v18 = vld [vmem:[%s6768_s2 + $0x48] sm:$0xff] (!%p2833_p6)  ;;  %v195_v22 = vld [vmem:[%s6768_s2 + $0x58] sm:$0xff] (!%p2833_p6)  ;;  %v194_v23 = vld [vmem:[%s6768_s2 + $0x50] sm:$0xff] (!%p2833_p6) }
  0x52   : > { %v222_v12 = vsub.s32 (!%p2833_p6), %v189_v10, %v4790_v3  ;;  %v221_v13 = vsub.s32 (!%p2833_p6), %v188_v11, %v4790_v3  ;;  %v224_v16 = vsub.s32 (!%p2833_p6), %v191_v14, %v4790_v3  ;;  %v223_v17 = vsub.s32 (!%p2833_p6), %v190_v15, %v4790_v3  ;;  %v197_v26 = vld [vmem:[%s6768_s2 + $0x68] sm:$0xff] (!%p2833_p6)  ;;  %v196_v27 = vld [vmem:[%s6768_s2 + $0x60] sm:$0xff] (!%p2833_p6)  ;;  %v199_v30 = vld [vmem:[%s6768_s2 + $0x78] sm:$0xff] (!%p2833_p6) }
  0x53   : > { %256 = vperm.xlu1 (!%p2833_p6), %4471, %v219_v6   ;;  %250 = vperm.xlu0 (!%p2833_p6), %4470, %v217_v7   ;;  %v226_v20 = vsub.s32 (!%p2833_p6), %v193_v18, %v4790_v3  ;;  %v225_v21 = vsub.s32 (!%p2833_p6), %v192_v19, %v4790_v3  ;;  %v228_v24 = vsub.s32 (!%p2833_p6), %v195_v22, %v4790_v3  ;;  %v198_v31 = vld [vmem:[%s6768_s2 + $0x70] sm:$0xff] (!%p2833_p6)  ;;  %v201_v34 = vld [vmem:[%s6768_s2 + $0x88] sm:$0xff] (!%p2833_p6)  ;;  %v200_v35 = vld [vmem:[%s6768_s2 + $0x80] sm:$0xff] (!%p2833_p6)  ;;  %v167_v4 = vlaneseq (!%p2833_p6) }
  0x54   : > { %v227_v25 = vsub.s32 (!%p2833_p6), %v194_v23, %v4790_v3  ;;  %v230_v28 = vsub.s32 (!%p2833_p6), %v197_v26, %v4790_v3  ;;  %v229_v29 = vsub.s32 (!%p2833_p6), %v196_v27, %v4790_v3  ;;  %v232_v32 = vsub.s32 (!%p2833_p6), %v199_v30, %v4790_v3  ;;  %v203_v38 = vld [vmem:[%s6768_s2 + $0x98] sm:$0xff] (!%p2833_p6)  ;;  %v202_v39 = vld [vmem:[%s6768_s2 + $0x90] sm:$0xff] (!%p2833_p6)  ;;  %v205_v42 = vld [vmem:[%s6768_s2 + $0xa8] sm:$0xff] (!%p2833_p6) }
  0x55   : > { %v231_v33 = vsub.s32 (!%p2833_p6), %v198_v31, %v4790_v3  ;;  %v234_v36 = vsub.s32 (!%p2833_p6), %v201_v34, %v4790_v3  ;;  %v233_v37 = vsub.s32 (!%p2833_p6), %v200_v35, %v4790_v3  ;;  %v236_v40 = vsub.s32 (!%p2833_p6), %v203_v38, %v4790_v3  ;;  %v204_v43 = vld [vmem:[%s6768_s2 + $0xa0] sm:$0xff] (!%p2833_p6)  ;;  %v207_v46 = vld [vmem:[%s6768_s2 + $0xb8] sm:$0xff] (!%p2833_p6)  ;;  %v206_v47 = vld [vmem:[%s6768_s2 + $0xb0] sm:$0xff] (!%p2833_p6) }
  0x56   : > { %v235_v41 = vsub.s32 %v202_v39, %v4790_v3  ;;  %v238_v44 = vsub.s32 %v205_v42, %v4790_v3  ;;  %v237_v45 = vsub.s32 %v204_v43, %v4790_v3  ;;  %v240_v48 = vsub.s32 %v207_v46, %v4790_v3  ;;  %v209_v50 = vld [vmem:[%s6768_s2 + $0xc8] sm:$0xff]  ;;  %v208_v51 = vld [vmem:[%s6768_s2 + $0xc0] sm:$0xff]  ;;  %v211_v54 = vld [vmem:[%s6768_s2 + $0xd8] sm:$0xff] }
  0x57   : > { %259 = vperm.xlu1 %4471, %v220_v8   ;;  %253 = vperm.xlu0 %4470, %v218_v9   ;;  %v239_v49 = vsub.s32 %v206_v47, %v4790_v3  ;;  %v242_v52 = vsub.s32 %v209_v50, %v4790_v3  ;;  %v241_v53 = vsub.s32 %v208_v51, %v4790_v3  ;;  %v210_v55 = vld [vmem:[%s6768_s2 + $0xd0] sm:$0xff]  ;;  %v213_v58 = vld [vmem:[%s6768_s2 + $0xe8] sm:$0xff]  ;;  %v212_v59 = vld [vmem:[%s6768_s2 + $0xe0] sm:$0xff]  ;;  %v4918_v5 = vand.u32 127, %v167_v4 }
  0x58   : > { %v244_v56 = vsub.s32 %v211_v54, %v4790_v3  ;;  %v243_v57 = vsub.s32 %v210_v55, %v4790_v3  ;;  %v246_v60 = vsub.s32 %v213_v58, %v4790_v3  ;;  %v245_v61 = vsub.s32 %v212_v59, %v4790_v3  ;;  %v215_v62 = vld [vmem:[%s6768_s2 + $0xf8] sm:$0xff]  ;;  %v214_v63 = vld [vmem:[%s6768_s2 + $0xf0] sm:$0xff]  ;;  %v4914_v2 = vld [vmem:[#allocation4 + $0x8] sm:$0xff] }
  0x59   : > { %v248_v0 = vsub.s32 %v215_v62, %v4790_v3  ;;  %v247_v1 = vsub.s32 %v214_v63, %v4790_v3  ;;  %1953 = vmatprep.mubr.f32.mxu0 %v4914_v2  ;;  %2042 = vmatprep.mubr.f32.mxu1 %v4914_v2  ;;  %v4925_v8 = vadd.s32 128, %v4918_v5  ;;  %v4928_v3 = vadd.s32 384, %v4918_v5  ;;  %v5349_v46 = vld [vmem:[#allocation4 + $0x18] sm:$0xff]  ;;  %v5368_v47 = vld [vmem:[#allocation4 + $0x10] sm:$0xff] }
  0x5a   : > { %v4935_v11 = vadd.s32 256, %v4918_v5  ;;  %v5316_v42 = vadd.s32 896, %v4918_v5  ;;  %v5322_v43 = vadd.s32 512, %v4918_v5  ;;  %v5431_v50 = vld [vmem:[#allocation4 + $0x38] sm:$0xff]  ;;  %v5454_v51 = vld [vmem:[#allocation4 + $0x30] sm:$0xff]  ;;  %v5729_v54 = vadd.s32 1024, %v4918_v5 }
  0x5b   : > { %265 = vperm.xlu1 %4471, %v222_v12   ;;  %262 = vperm.xlu0 %4470, %v221_v13   ;;  %v4625_v12 = vmov 1.0|1.0   ;;  %v5735_v55 = vadd.s32 1280, %v4918_v5  ;;  %v6079_v58 = vadd.s32 1920, %v4918_v5  ;;  %v6085_v59 = vadd.s32 1536, %v4918_v5  ;;  %v6137_v62 = vld [vmem:[#allocation4 + $0x18] sm:$0xff] }
  0x5c   : > { %v6151_v63 = vld [vmem:[#allocation4 + $0x10] sm:$0xff] }
  0x5d   : > { %v6243_v4 = vld [vmem:[#allocation4 + $0x30] sm:$0xff] }
  0x5f   : > { %271 = vperm.xlu1 %4471, %v224_v16   ;;  %268 = vperm.xlu0 %4470, %v223_v17  }
  0x63   : > { %277 = vperm.xlu1 %4471, %v226_v20   ;;  %274 = vperm.xlu0 %4470, %v225_v21  }
  0x67   : > { %283 = vperm.xlu1 %4471, %v228_v24   ;;  %280 = vperm.xlu0 %4470, %v227_v25  }
  0x6b   : > { %289 = vperm.xlu1 %4471, %v230_v28   ;;  %286 = vperm.xlu0 %4470, %v229_v29  }
  0x6f   : > { %295 = vperm.xlu1 %4471, %v232_v32   ;;  %292 = vperm.xlu0 %4470, %v231_v33  }
  0x73   : > { %301 = vperm.xlu1 %4471, %v234_v36   ;;  %298 = vperm.xlu0 %4470, %v233_v37  }
  0x77   : > { %307 = vperm.xlu1 %4471, %v236_v40   ;;  %304 = vperm.xlu0 %4470, %v235_v41   ;;  %v5308_v41 = vadd.s32 640, %v4918_v5 }
  0x7b   : > { %313 = vperm.xlu1 %4471, %v238_v44   ;;  %310 = vperm.xlu0 %4470, %v237_v45   ;;  %v5328_v44 = vadd.s32 768, %v4918_v5  ;;  %v5333_v45 = vld [vmem:[#allocation4] sm:$0xff] }
  0x7f   : > { %319 = vperm.xlu1 %4471, %v240_v48   ;;  %316 = vperm.xlu0 %4470, %v239_v49   ;;  %v5388_v48 = vld [vmem:[#allocation4 + $0x28] sm:$0xff]  ;;  %v5408_v49 = vld [vmem:[#allocation4 + $0x20] sm:$0xff] }
  0x83   : > { %325 = vperm.xlu1 %4471, %v242_v52   ;;  %322 = vperm.xlu0 %4470, %v241_v53   ;;  %v5715_v52 = vadd.s32 1152, %v4918_v5  ;;  %v5723_v53 = vadd.s32 1408, %v4918_v5 }
  0x87   : > { %331 = vperm.xlu1 %4471, %v244_v56   ;;  %328 = vperm.xlu0 %4470, %v243_v57   ;;  %v5845_v56 = vld [vmem:[#allocation4 + $0x8] sm:$0xff]  ;;  %v6071_v57 = vadd.s32 1664, %v4918_v5 }
  0x8b   : > { %337 = vperm.xlu1 %4471, %v246_v60   ;;  %334 = vperm.xlu0 %4470, %v245_v61   ;;  %v6091_v60 = vadd.s32 1792, %v4918_v5  ;;  %v6111_v61 = vld [vmem:[#allocation4] sm:$0xff] }
  0x8f   : > { %343 = vperm.xlu1 %4471, %v248_v0   ;;  %340 = vperm.xlu0 %4470, %v247_v1   ;;  %v6174_v0 = vld [vmem:[#allocation4 + $0x28] sm:$0xff]  ;;  %v6197_v1 = vld [vmem:[#allocation4 + $0x20] sm:$0xff] }
  0xd2   : > { %v4920_v6 = vpop.permute.xlu1 %256  ;;  %v4922_v7 = vpop.permute.xlu0 %250 }
  0xd3   : > { %vm346_vm0 = vcmp.eq.s32.totalorder %v4922_v7, %v4925_v8  ;;  %vm348_vm5 = vcmp.eq.s32.totalorder %v4922_v7, %v4928_v3  ;;  %vm345_vm8 = vcmp.eq.s32.totalorder %v4922_v7, %v4918_v5  ;;  %vm378_vm9 = vcmp.eq.s32.totalorder %v4920_v6, %v4925_v8 }
  0xd4   : > { %vm347_vm12 = vcmp.eq.s32.totalorder %v4922_v7, %v4935_v11  ;;  %vm380_vm13 = vcmp.eq.s32.totalorder %v4920_v6, %v4928_v3 }
  0xd6   : > { %v4930_v9 = vpop.permute.xlu1 %259  ;;  %v4932_v10 = vpop.permute.xlu0 %253 }
  0xd7   : > { %vm362_vm1 = vcmp.eq.s32.totalorder %v4932_v10, %v4925_v8  ;;  %vm364_vm2 = vcmp.eq.s32.totalorder %v4932_v10, %v4928_v3  ;;  %vm361_vm3 = vcmp.eq.s32.totalorder %v4932_v10, %v4918_v5  ;;  %vm363_vm6 = vcmp.eq.s32.totalorder %v4932_v10, %v4935_v11 }
  0xd8   : > { %vm3867_vm4 = vmpackc.low %vm362_vm1, %vm346_vm0  ;;  %vm394_vm10 = vcmp.eq.s32.totalorder %v4930_v9, %v4925_v8  ;;  %vm396_vm14 = vcmp.eq.s32.totalorder %v4930_v9, %v4928_v3  ;;  %vm377_vm0 = vcmp.eq.s32.totalorder %v4920_v6, %v4918_v5  ;;  %vm393_vm1 = vcmp.eq.s32.totalorder %v4930_v9, %v4918_v5 }
  0xd9   : > { %3868 = vmatprep.subr.msk.bf16.mxu0 %vm3867_vm4, %v4625_v12  ;;  %vm3931_vm7 = vmpackc.low %vm364_vm2, %vm348_vm5  ;;  %vm395_vm4 = vcmp.eq.s32.totalorder %v4930_v9, %v4935_v11 }
  0xda   : > { %3932 = vmatprep.subr.msk.bf16.mxu1 %vm3931_vm7, %v4625_v12  ;;  %v4957_v13 = vpop.permute.xlu1 %265  ;;  %vm3869_vm11 = vmpackc.low %vm361_vm3, %vm345_vm8  ;;  %v4961_v14 = vpop.permute.xlu0 %262  ;;  %vm379_vm3 = vcmp.eq.s32.totalorder %v4920_v6, %v4935_v11 }
  0xdb   : > { %3870 = vmatpush1.bf16.msk.msra.mxu0 %vm3869_vm11, %v4625_v12  ;;  %vm3933_vm15 = vmpackc.low %vm363_vm6, %vm347_vm12  ;;  %vm410_vm6 = vcmp.eq.s32.totalorder %v4961_v14, %v4925_v8  ;;  %vm426_vm7 = vcmp.eq.s32.totalorder %v4957_v13, %v4925_v8  ;;  %vm409_vm12 = vcmp.eq.s32.totalorder %v4961_v14, %v4918_v5 }
  0xdc   : > { %3934 = vmatpush1.bf16.msk.msra.mxu1 %vm3933_vm15, %v4625_v12  ;;  %vm3871_vm2 = vmpackc.low %vm394_vm10, %vm378_vm9  ;;  %vm412_vm9 = vcmp.eq.s32.totalorder %v4961_v14, %v4928_v3  ;;  %vm428_vm10 = vcmp.eq.s32.totalorder %v4957_v13, %v4928_v3  ;;  %vm411_vm15 = vcmp.eq.s32.totalorder %v4961_v14, %v4935_v11 }
  0xdd   : > { %3872 = vmatprep.subr.msk.bf16.mxu0 %vm3871_vm2, %v4625_v12  ;;  %vm3935_vm5 = vmpackc.low %vm396_vm14, %vm380_vm13  ;;  %vm425_vm13 = vcmp.eq.s32.totalorder %v4957_v13, %v4918_v5 }
  0xde   : > { %3936 = vmatprep.subr.msk.bf16.mxu1 %vm3935_vm5, %v4625_v12  ;;  %v4986_v15 = vpop.permute.xlu1 %271  ;;  %vm3873_vm8 = vmpackc.low %vm393_vm1, %vm377_vm0  ;;  %v4988_v16 = vpop.permute.xlu0 %268  ;;  %vm427_vm0 = vcmp.eq.s32.totalorder %v4957_v13, %v4935_v11 }
  0xdf   : > { %3874 = vmatpush1.bf16.msk.msra.mxu0 %vm3873_vm8, %v4625_v12  ;;  %vm3937_vm11 = vmpackc.low %vm395_vm4, %vm379_vm3  ;;  %vm442_vm2 = vcmp.eq.s32.totalorder %v4988_v16, %v4925_v8  ;;  %vm458_vm3 = vcmp.eq.s32.totalorder %v4986_v15, %v4925_v8  ;;  %vm444_vm5 = vcmp.eq.s32.totalorder %v4988_v16, %v4928_v3  ;;  %vm441_vm8 = vcmp.eq.s32.totalorder %v4988_v16, %v4918_v5 }
  0xe0   : > { %3938 = vmatpush1.bf16.msk.msra.mxu1 %vm3937_vm11, %v4625_v12  ;;  %vm3875_vm14 = vmpackc.low %vm426_vm7, %vm410_vm6  ;;  %vm460_vm6 = vcmp.eq.s32.totalorder %v4986_v15, %v4928_v3  ;;  %vm443_vm11 = vcmp.eq.s32.totalorder %v4988_v16, %v4935_v11 }
  0xe1   : > { %3876 = vmatprep.subr.msk.bf16.mxu0 %vm3875_vm14, %v4625_v12  ;;  %vm3939_vm1 = vmpackc.low %vm428_vm10, %vm412_vm9  ;;  %vm457_vm9 = vcmp.eq.s32.totalorder %v4986_v15, %v4918_v5 }
  0xe2   : > { %3940 = vmatprep.subr.msk.bf16.mxu1 %vm3939_vm1, %v4625_v12  ;;  %v5010_v17 = vpop.permute.xlu1 %277  ;;  %vm3877_vm4 = vmpackc.low %vm425_vm13, %vm409_vm12  ;;  %v5012_v18 = vpop.permute.xlu0 %274  ;;  %vm459_vm12 = vcmp.eq.s32.totalorder %v4986_v15, %v4935_v11 }
  0xe3   : > { %3878 = vmatpush1.bf16.msk.msra.mxu0 %vm3877_vm4, %v4625_v12  ;;  %vm3941_vm7 = vmpackc.low %vm427_vm0, %vm411_vm15  ;;  %vm474_vm14 = vcmp.eq.s32.totalorder %v5012_v18, %v4925_v8  ;;  %vm490_vm15 = vcmp.eq.s32.totalorder %v5010_v17, %v4925_v8  ;;  %vm476_vm1 = vcmp.eq.s32.totalorder %v5012_v18, %v4928_v3  ;;  %vm473_vm4 = vcmp.eq.s32.totalorder %v5012_v18, %v4918_v5 }
  0xe4   : > { %3942 = vmatpush1.bf16.msk.msra.mxu1 %vm3941_vm7, %v4625_v12  ;;  %vm3879_vm10 = vmpackc.low %vm458_vm3, %vm442_vm2  ;;  %vm492_vm2 = vcmp.eq.s32.totalorder %v5010_v17, %v4928_v3  ;;  %vm475_vm7 = vcmp.eq.s32.totalorder %v5012_v18, %v4935_v11 }
  0xe5   : > { %3880 = vmatprep.subr.msk.bf16.mxu0 %vm3879_vm10, %v4625_v12  ;;  %vm3943_vm13 = vmpackc.low %vm460_vm6, %vm444_vm5  ;;  %vm489_vm5 = vcmp.eq.s32.totalorder %v5010_v17, %v4918_v5 }
  0xe6   : > { %3944 = vmatprep.subr.msk.bf16.mxu1 %vm3943_vm13, %v4625_v12  ;;  %v5034_v19 = vpop.permute.xlu1 %283  ;;  %vm3881_vm0 = vmpackc.low %vm457_vm9, %vm441_vm8  ;;  %v5036_v20 = vpop.permute.xlu0 %280  ;;  %vm491_vm8 = vcmp.eq.s32.totalorder %v5010_v17, %v4935_v11 }
  0xe7   : > { %3882 = vmatpush1.bf16.msk.msra.mxu0 %vm3881_vm0, %v4625_v12  ;;  %vm3945_vm3 = vmpackc.low %vm459_vm12, %vm443_vm11  ;;  %vm506_vm10 = vcmp.eq.s32.totalorder %v5036_v20, %v4925_v8  ;;  %vm522_vm11 = vcmp.eq.s32.totalorder %v5034_v19, %v4925_v8  ;;  %vm508_vm13 = vcmp.eq.s32.totalorder %v5036_v20, %v4928_v3  ;;  %vm505_vm0 = vcmp.eq.s32.totalorder %v5036_v20, %v4918_v5 }
  0xe8   : > { %3946 = vmatpush1.bf16.msk.msra.mxu1 %vm3945_vm3, %v4625_v12  ;;  %vm3883_vm6 = vmpackc.low %vm490_vm15, %vm474_vm14  ;;  %vm524_vm14 = vcmp.eq.s32.totalorder %v5034_v19, %v4928_v3  ;;  %vm507_vm3 = vcmp.eq.s32.totalorder %v5036_v20, %v4935_v11 }
  0xe9   : > { %3884 = vmatprep.subr.msk.bf16.mxu0 %vm3883_vm6, %v4625_v12  ;;  %vm3947_vm9 = vmpackc.low %vm492_vm2, %vm476_vm1  ;;  %vm521_vm1 = vcmp.eq.s32.totalorder %v5034_v19, %v4918_v5 }
  0xea   : > { %3948 = vmatprep.subr.msk.bf16.mxu1 %vm3947_vm9, %v4625_v12  ;;  %v5058_v21 = vpop.permute.xlu1 %289  ;;  %vm3885_vm12 = vmpackc.low %vm489_vm5, %vm473_vm4  ;;  %v5060_v22 = vpop.permute.xlu0 %286  ;;  %vm523_vm4 = vcmp.eq.s32.totalorder %v5034_v19, %v4935_v11 }
  0xeb   : > { %3886 = vmatpush1.bf16.msk.msra.mxu0 %vm3885_vm12, %v4625_v12  ;;  %vm3949_vm15 = vmpackc.low %vm491_vm8, %vm475_vm7  ;;  %vm538_vm6 = vcmp.eq.s32.totalorder %v5060_v22, %v4925_v8  ;;  %vm554_vm7 = vcmp.eq.s32.totalorder %v5058_v21, %v4925_v8  ;;  %vm540_vm9 = vcmp.eq.s32.totalorder %v5060_v22, %v4928_v3  ;;  %vm537_vm12 = vcmp.eq.s32.totalorder %v5060_v22, %v4918_v5 }
  0xec   : > { %3950 = vmatpush1.bf16.msk.msra.mxu1 %vm3949_vm15, %v4625_v12  ;;  %vm3887_vm2 = vmpackc.low %vm522_vm11, %vm506_vm10  ;;  %vm556_vm10 = vcmp.eq.s32.totalorder %v5058_v21, %v4928_v3  ;;  %vm539_vm15 = vcmp.eq.s32.totalorder %v5060_v22, %v4935_v11 }
  0xed   : > { %3888 = vmatprep.subr.msk.bf16.mxu0 %vm3887_vm2, %v4625_v12  ;;  %vm3951_vm5 = vmpackc.low %vm524_vm14, %vm508_vm13  ;;  %vm553_vm13 = vcmp.eq.s32.totalorder %v5058_v21, %v4918_v5 }
  0xee   : > { %3952 = vmatprep.subr.msk.bf16.mxu1 %vm3951_vm5, %v4625_v12  ;;  %v5082_v23 = vpop.permute.xlu1 %295  ;;  %vm3889_vm8 = vmpackc.low %vm521_vm1, %vm505_vm0  ;;  %v5084_v24 = vpop.permute.xlu0 %292  ;;  %vm555_vm0 = vcmp.eq.s32.totalorder %v5058_v21, %v4935_v11 }
  0xef   : > { %3890 = vmatpush1.bf16.msk.msra.mxu0 %vm3889_vm8, %v4625_v12  ;;  %vm3953_vm11 = vmpackc.low %vm523_vm4, %vm507_vm3  ;;  %vm570_vm2 = vcmp.eq.s32.totalorder %v5084_v24, %v4925_v8  ;;  %vm586_vm3 = vcmp.eq.s32.totalorder %v5082_v23, %v4925_v8  ;;  %vm572_vm5 = vcmp.eq.s32.totalorder %v5084_v24, %v4928_v3  ;;  %vm569_vm8 = vcmp.eq.s32.totalorder %v5084_v24, %v4918_v5 }
  0xf0   : > { %3954 = vmatpush1.bf16.msk.msra.mxu1 %vm3953_vm11, %v4625_v12  ;;  %vm3891_vm14 = vmpackc.low %vm554_vm7, %vm538_vm6  ;;  %vm588_vm6 = vcmp.eq.s32.totalorder %v5082_v23, %v4928_v3  ;;  %vm571_vm11 = vcmp.eq.s32.totalorder %v5084_v24, %v4935_v11 }
  0xf1   : > { %3892 = vmatprep.subr.msk.bf16.mxu0 %vm3891_vm14, %v4625_v12  ;;  %vm3955_vm1 = vmpackc.low %vm556_vm10, %vm540_vm9  ;;  %vm585_vm9 = vcmp.eq.s32.totalorder %v5082_v23, %v4918_v5 }
  0xf2   : > { %3956 = vmatprep.subr.msk.bf16.mxu1 %vm3955_vm1, %v4625_v12  ;;  %v5106_v25 = vpop.permute.xlu1 %301  ;;  %vm3893_vm4 = vmpackc.low %vm553_vm13, %vm537_vm12  ;;  %v5108_v26 = vpop.permute.xlu0 %298  ;;  %vm587_vm12 = vcmp.eq.s32.totalorder %v5082_v23, %v4935_v11 }
  0xf3   : > { %3894 = vmatpush1.bf16.msk.msra.mxu0 %vm3893_vm4, %v4625_v12  ;;  %vm3957_vm7 = vmpackc.low %vm555_vm0, %vm539_vm15  ;;  %vm602_vm14 = vcmp.eq.s32.totalorder %v5108_v26, %v4925_v8  ;;  %vm618_vm15 = vcmp.eq.s32.totalorder %v5106_v25, %v4925_v8  ;;  %vm604_vm1 = vcmp.eq.s32.totalorder %v5108_v26, %v4928_v3  ;;  %vm601_vm4 = vcmp.eq.s32.totalorder %v5108_v26, %v4918_v5 }
  0xf4   : > { %3958 = vmatpush1.bf16.msk.msra.mxu1 %vm3957_vm7, %v4625_v12  ;;  %vm3895_vm10 = vmpackc.low %vm586_vm3, %vm570_vm2  ;;  %vm620_vm2 = vcmp.eq.s32.totalorder %v5106_v25, %v4928_v3  ;;  %vm603_vm7 = vcmp.eq.s32.totalorder %v5108_v26, %v4935_v11 }
  0xf5   : > { %3896 = vmatprep.subr.msk.bf16.mxu0 %vm3895_vm10, %v4625_v12  ;;  %vm3959_vm13 = vmpackc.low %vm588_vm6, %vm572_vm5  ;;  %vm617_vm5 = vcmp.eq.s32.totalorder %v5106_v25, %v4918_v5 }
  0xf6   : > { %3960 = vmatprep.subr.msk.bf16.mxu1 %vm3959_vm13, %v4625_v12  ;;  %v5130_v27 = vpop.permute.xlu1 %307  ;;  %vm3897_vm0 = vmpackc.low %vm585_vm9, %vm569_vm8  ;;  %v5132_v28 = vpop.permute.xlu0 %304  ;;  %vm619_vm8 = vcmp.eq.s32.totalorder %v5106_v25, %v4935_v11 }
  0xf7   : > { %3898 = vmatpush1.bf16.msk.msra.mxu0 %vm3897_vm0, %v4625_v12  ;;  %vm3961_vm3 = vmpackc.low %vm587_vm12, %vm571_vm11  ;;  %vm634_vm10 = vcmp.eq.s32.totalorder %v5132_v28, %v4925_v8  ;;  %vm650_vm11 = vcmp.eq.s32.totalorder %v5130_v27, %v4925_v8  ;;  %vm636_vm13 = vcmp.eq.s32.totalorder %v5132_v28, %v4928_v3  ;;  %vm633_vm0 = vcmp.eq.s32.totalorder %v5132_v28, %v4918_v5 }
  0xf8   : > { %3962 = vmatpush1.bf16.msk.msra.mxu1 %vm3961_vm3, %v4625_v12  ;;  %vm3899_vm6 = vmpackc.low %vm618_vm15, %vm602_vm14  ;;  %vm652_vm14 = vcmp.eq.s32.totalorder %v5130_v27, %v4928_v3  ;;  %vm635_vm3 = vcmp.eq.s32.totalorder %v5132_v28, %v4935_v11 }
  0xf9   : > { %3900 = vmatprep.subr.msk.bf16.mxu0 %vm3899_vm6, %v4625_v12  ;;  %vm3963_vm9 = vmpackc.low %vm620_vm2, %vm604_vm1  ;;  %vm649_vm1 = vcmp.eq.s32.totalorder %v5130_v27, %v4918_v5 }
  0xfa   : > { %3964 = vmatprep.subr.msk.bf16.mxu1 %vm3963_vm9, %v4625_v12  ;;  %v5154_v29 = vpop.permute.xlu1 %313  ;;  %vm3901_vm12 = vmpackc.low %vm617_vm5, %vm601_vm4  ;;  %v5156_v30 = vpop.permute.xlu0 %310  ;;  %vm651_vm4 = vcmp.eq.s32.totalorder %v5130_v27, %v4935_v11 }
  0xfb   : > { %3902 = vmatpush1.bf16.msk.msra.mxu0 %vm3901_vm12, %v4625_v12  ;;  %vm3965_vm15 = vmpackc.low %vm619_vm8, %vm603_vm7  ;;  %vm666_vm6 = vcmp.eq.s32.totalorder %v5156_v30, %v4925_v8  ;;  %vm682_vm7 = vcmp.eq.s32.totalorder %v5154_v29, %v4925_v8  ;;  %vm668_vm9 = vcmp.eq.s32.totalorder %v5156_v30, %v4928_v3  ;;  %vm665_vm12 = vcmp.eq.s32.totalorder %v5156_v30, %v4918_v5 }
  0xfc   : > { %3966 = vmatpush1.bf16.msk.msra.mxu1 %vm3965_vm15, %v4625_v12  ;;  %vm3903_vm2 = vmpackc.low %vm650_vm11, %vm634_vm10  ;;  %vm684_vm10 = vcmp.eq.s32.totalorder %v5154_v29, %v4928_v3  ;;  %vm667_vm15 = vcmp.eq.s32.totalorder %v5156_v30, %v4935_v11 }
  0xfd   : > { %3904 = vmatprep.subr.msk.bf16.mxu0 %vm3903_vm2, %v4625_v12  ;;  %vm3967_vm5 = vmpackc.low %vm652_vm14, %vm636_vm13  ;;  %vm681_vm13 = vcmp.eq.s32.totalorder %v5154_v29, %v4918_v5 }
  0xfe   : > { %3968 = vmatprep.subr.msk.bf16.mxu1 %vm3967_vm5, %v4625_v12  ;;  %v5178_v31 = vpop.permute.xlu1 %319  ;;  %vm3905_vm8 = vmpackc.low %vm649_vm1, %vm633_vm0  ;;  %v5180_v32 = vpop.permute.xlu0 %316  ;;  %vm683_vm0 = vcmp.eq.s32.totalorder %v5154_v29, %v4935_v11 }
  0xff   : > { %3906 = vmatpush1.bf16.msk.msra.mxu0 %vm3905_vm8, %v4625_v12  ;;  %vm3969_vm11 = vmpackc.low %vm651_vm4, %vm635_vm3  ;;  %vm698_vm2 = vcmp.eq.s32.totalorder %v5180_v32, %v4925_v8  ;;  %vm714_vm3 = vcmp.eq.s32.totalorder %v5178_v31, %v4925_v8  ;;  %vm700_vm5 = vcmp.eq.s32.totalorder %v5180_v32, %v4928_v3  ;;  %vm697_vm8 = vcmp.eq.s32.totalorder %v5180_v32, %v4918_v5 }
 0x100   : > { %3970 = vmatpush1.bf16.msk.msra.mxu1 %vm3969_vm11, %v4625_v12  ;;  %vm3907_vm14 = vmpackc.low %vm682_vm7, %vm666_vm6  ;;  %vm716_vm6 = vcmp.eq.s32.totalorder %v5178_v31, %v4928_v3  ;;  %vm699_vm11 = vcmp.eq.s32.totalorder %v5180_v32, %v4935_v11 }
 0x101   : > { %3908 = vmatprep.subr.msk.bf16.mxu0 %vm3907_vm14, %v4625_v12  ;;  %vm3971_vm1 = vmpackc.low %vm684_vm10, %vm668_vm9  ;;  %vm713_vm9 = vcmp.eq.s32.totalorder %v5178_v31, %v4918_v5 }
 0x102   : > { %3972 = vmatprep.subr.msk.bf16.mxu1 %vm3971_vm1, %v4625_v12  ;;  %v5202_v33 = vpop.permute.xlu1 %325  ;;  %vm3909_vm4 = vmpackc.low %vm681_vm13, %vm665_vm12  ;;  %v5204_v34 = vpop.permute.xlu0 %322  ;;  %vm715_vm12 = vcmp.eq.s32.totalorder %v5178_v31, %v4935_v11 }
 0x103   : > { %3910 = vmatpush1.bf16.msk.msra.mxu0 %vm3909_vm4, %v4625_v12  ;;  %vm3973_vm7 = vmpackc.low %vm683_vm0, %vm667_vm15  ;;  %vm730_vm14 = vcmp.eq.s32.totalorder %v5204_v34, %v4925_v8  ;;  %vm746_vm15 = vcmp.eq.s32.totalorder %v5202_v33, %v4925_v8  ;;  %vm732_vm1 = vcmp.eq.s32.totalorder %v5204_v34, %v4928_v3  ;;  %vm729_vm4 = vcmp.eq.s32.totalorder %v5204_v34, %v4918_v5 }
 0x104   : > { %3974 = vmatpush1.bf16.msk.msra.mxu1 %vm3973_vm7, %v4625_v12  ;;  %vm3911_vm10 = vmpackc.low %vm714_vm3, %vm698_vm2  ;;  %vm748_vm2 = vcmp.eq.s32.totalorder %v5202_v33, %v4928_v3  ;;  %vm731_vm7 = vcmp.eq.s32.totalorder %v5204_v34, %v4935_v11 }
 0x105   : > { %3912 = vmatprep.subr.msk.bf16.mxu0 %vm3911_vm10, %v4625_v12  ;;  %vm3975_vm13 = vmpackc.low %vm716_vm6, %vm700_vm5  ;;  %vm745_vm5 = vcmp.eq.s32.totalorder %v5202_v33, %v4918_v5 }
 0x106   : > { %3976 = vmatprep.subr.msk.bf16.mxu1 %vm3975_vm13, %v4625_v12  ;;  %v5226_v35 = vpop.permute.xlu1 %331  ;;  %vm3913_vm0 = vmpackc.low %vm713_vm9, %vm697_vm8  ;;  %v5228_v36 = vpop.permute.xlu0 %328  ;;  %vm747_vm8 = vcmp.eq.s32.totalorder %v5202_v33, %v4935_v11 }
 0x107   : > { %3914 = vmatpush1.bf16.msk.msra.mxu0 %vm3913_vm0, %v4625_v12  ;;  %vm3977_vm3 = vmpackc.low %vm715_vm12, %vm699_vm11  ;;  %vm762_vm10 = vcmp.eq.s32.totalorder %v5228_v36, %v4925_v8  ;;  %vm778_vm11 = vcmp.eq.s32.totalorder %v5226_v35, %v4925_v8  ;;  %vm764_vm13 = vcmp.eq.s32.totalorder %v5228_v36, %v4928_v3  ;;  %vm761_vm0 = vcmp.eq.s32.totalorder %v5228_v36, %v4918_v5 }
 0x108   : > { %3978 = vmatpush1.bf16.msk.msra.mxu1 %vm3977_vm3, %v4625_v12  ;;  %vm3915_vm6 = vmpackc.low %vm746_vm15, %vm730_vm14  ;;  %vm780_vm14 = vcmp.eq.s32.totalorder %v5226_v35, %v4928_v3  ;;  %vm763_vm3 = vcmp.eq.s32.totalorder %v5228_v36, %v4935_v11 }
 0x109   : > { %3916 = vmatprep.subr.msk.bf16.mxu0 %vm3915_vm6, %v4625_v12  ;;  %vm3979_vm9 = vmpackc.low %vm748_vm2, %vm732_vm1  ;;  %vm777_vm1 = vcmp.eq.s32.totalorder %v5226_v35, %v4918_v5 }
 0x10a   : > { %3980 = vmatprep.subr.msk.bf16.mxu1 %vm3979_vm9, %v4625_v12  ;;  %v5250_v37 = vpop.permute.xlu1 %337  ;;  %vm3917_vm12 = vmpackc.low %vm745_vm5, %vm729_vm4  ;;  %v5252_v38 = vpop.permute.xlu0 %334  ;;  %vm779_vm4 = vcmp.eq.s32.totalorder %v5226_v35, %v4935_v11 }
 0x10b   : > { %3918 = vmatpush1.bf16.msk.msra.mxu0 %vm3917_vm12, %v4625_v12  ;;  %vm3981_vm15 = vmpackc.low %vm747_vm8, %vm731_vm7  ;;  %vm794_vm6 = vcmp.eq.s32.totalorder %v5252_v38, %v4925_v8  ;;  %vm810_vm7 = vcmp.eq.s32.totalorder %v5250_v37, %v4925_v8  ;;  %vm796_vm9 = vcmp.eq.s32.totalorder %v5252_v38, %v4928_v3  ;;  %vm793_vm12 = vcmp.eq.s32.totalorder %v5252_v38, %v4918_v5 }
 0x10c   : > { %3982 = vmatpush1.bf16.msk.msra.mxu1 %vm3981_vm15, %v4625_v12  ;;  %vm3919_vm2 = vmpackc.low %vm778_vm11, %vm762_vm10  ;;  %vm812_vm10 = vcmp.eq.s32.totalorder %v5250_v37, %v4928_v3  ;;  %vm795_vm15 = vcmp.eq.s32.totalorder %v5252_v38, %v4935_v11 }
 0x10d   : > { %3920 = vmatprep.subr.msk.bf16.mxu0 %vm3919_vm2, %v4625_v12  ;;  %vm3983_vm5 = vmpackc.low %vm780_vm14, %vm764_vm13  ;;  %vm809_vm13 = vcmp.eq.s32.totalorder %v5250_v37, %v4918_v5 }
 0x10e   : > { %3984 = vmatprep.subr.msk.bf16.mxu1 %vm3983_vm5, %v4625_v12  ;;  %v5274_v39 = vpop.permute.xlu1 %343  ;;  %vm3921_vm8 = vmpackc.low %vm777_vm1, %vm761_vm0  ;;  %v5276_v40 = vpop.permute.xlu0 %340  ;;  %vm811_vm0 = vcmp.eq.s32.totalorder %v5250_v37, %v4935_v11 }
 0x10f   : > { %3922 = vmatpush1.bf16.msk.msra.mxu0 %vm3921_vm8, %v4625_v12  ;;  %vm3985_vm11 = vmpackc.low %vm779_vm4, %vm763_vm3  ;;  %vm826_vm2 = vcmp.eq.s32.totalorder %v5276_v40, %v4925_v8  ;;  %vm842_vm3 = vcmp.eq.s32.totalorder %v5274_v39, %v4925_v8  ;;  %vm828_vm5 = vcmp.eq.s32.totalorder %v5276_v40, %v4928_v3  ;;  %vm825_vm8 = vcmp.eq.s32.totalorder %v5276_v40, %v4918_v5 }
 0x110   : > { %3986 = vmatpush1.bf16.msk.msra.mxu1 %vm3985_vm11, %v4625_v12  ;;  %vm3923_vm14 = vmpackc.low %vm810_vm7, %vm794_vm6  ;;  %vm844_vm6 = vcmp.eq.s32.totalorder %v5274_v39, %v4928_v3  ;;  %vm827_vm11 = vcmp.eq.s32.totalorder %v5276_v40, %v4935_v11 }
 0x111   : > { %3924 = vmatprep.subr.msk.bf16.mxu0 %vm3923_vm14, %v4625_v12  ;;  %vm3987_vm1 = vmpackc.low %vm812_vm10, %vm796_vm9  ;;  %vm841_vm9 = vcmp.eq.s32.totalorder %v5274_v39, %v4918_v5  ;;  %vm366_vm14 = vcmp.eq.s32.totalorder %v4932_v10, %v5308_v41 }
 0x112   : > { %3988 = vmatprep.subr.msk.bf16.mxu1 %vm3987_vm1, %v4625_v12  ;;  %vm3925_vm4 = vmpackc.low %vm809_vm13, %vm793_vm12  ;;  %vm843_vm12 = vcmp.eq.s32.totalorder %v5274_v39, %v4935_v11 }
 0x113   : > { %3926 = vmatpush1.bf16.msk.msra.mxu0 %vm3925_vm4, %v4625_v12  ;;  %vm3989_vm7 = vmpackc.low %vm811_vm0, %vm795_vm15  ;;  %vm368_vm0 = vcmp.eq.s32.totalorder %v4932_v10, %v5316_v42 }
 0x114   : > { %3990 = vmatpush1.bf16.msk.msra.mxu1 %vm3989_vm7, %v4625_v12  ;;  %vm3927_vm10 = vmpackc.low %vm842_vm3, %vm826_vm2  ;;  %vm350_vm2 = vcmp.eq.s32.totalorder %v4922_v7, %v5308_v41  ;;  %vm365_vm3 = vcmp.eq.s32.totalorder %v4932_v10, %v5322_v43 }
 0x115   : > { %3928 = vmatprep.subr.msk.bf16.mxu0 %vm3927_vm10, %v4625_v12  ;;  %vm3991_vm13 = vmpackc.low %vm844_vm6, %vm828_vm5  ;;  %vm352_vm5 = vcmp.eq.s32.totalorder %v4922_v7, %v5316_v42  ;;  %vm367_vm6 = vcmp.eq.s32.totalorder %v4932_v10, %v5328_v44  ;;  %vm398_vm10 = vcmp.eq.s32.totalorder %v4930_v9, %v5308_v41 }
 0x116   : > { %3992 = vmatprep.subr.msk.bf16.mxu1 %vm3991_vm13, %v4625_v12  ;;  %vm3929_vm15 = vmpackc.low %vm841_vm9, %vm825_vm8  ;;  %vm349_vm8 = vcmp.eq.s32.totalorder %v4922_v7, %v5322_v43  ;;  %vm382_vm9 = vcmp.eq.s32.totalorder %v4920_v6, %v5308_v41  ;;  %vm384_vm13 = vcmp.eq.s32.totalorder %v4920_v6, %v5316_v42 }
 0x117   : > { %3930 = vmatpush1.bf16.msk.msra.mxu0 %vm3929_vm15, %v4625_v12  ;;  %vm3993_vm1 = vmpackc.low %vm843_vm12, %vm827_vm11  ;;  %vm351_vm12 = vcmp.eq.s32.totalorder %v4922_v7, %v5328_v44 }
 0x118   : > { %3994 = vmatpush1.bf16.msk.msra.mxu1 %vm3993_vm1, %v4625_v12  ;;  %vm3995_vm4 = vmpackc.low %vm366_vm14, %vm350_vm2  ;;  %vm400_vm14 = vcmp.eq.s32.totalorder %v4930_v9, %v5316_v42  ;;  %vm397_vm1 = vcmp.eq.s32.totalorder %v4930_v9, %v5322_v43 }
 0x119   : > { %3996 = vmatprep.subr.msk.bf16.mxu0 %vm3995_vm4, %v4625_v12  ;;  %vm4059_vm7 = vmpackc.low %vm368_vm0, %vm352_vm5  ;;  %vm381_vm0 = vcmp.eq.s32.totalorder %v4920_v6, %v5322_v43  ;;  %vm399_vm4 = vcmp.eq.s32.totalorder %v4930_v9, %v5328_v44 }
 0x11a   : > { %4060 = vmatprep.subr.msk.bf16.mxu1 %vm4059_vm7, %v4625_v12  ;;  %1954 = vmatmul.mubr.f32.vlgmr.msra.gmra.mrb[0].mxu0 %v5333_v45  ;;  %vm3997_vm11 = vmpackc.low %vm365_vm3, %vm349_vm8  ;;  %vm383_vm3 = vcmp.eq.s32.totalorder %v4920_v6, %v5328_v44  ;;  %vm430_vm7 = vcmp.eq.s32.totalorder %v4957_v13, %v5308_v41 }
 0x11b   : > { %2043 = vmatmul.mubr.f32.vlgmr.msra.gmra.mrb[0].mxu1 %v5333_v45  ;;  %3998 = vmatpush1.bf16.msk.msra.mxu0 %vm3997_vm11, %v4625_v12  ;;  %vm4061_vm15 = vmpackc.low %vm367_vm6, %vm351_vm12  ;;  %vm414_vm6 = vcmp.eq.s32.totalorder %v4961_v14, %v5308_v41  ;;  %vm413_vm12 = vcmp.eq.s32.totalorder %v4961_v14, %v5322_v43 }
 0x11c   : > { %4062 = vmatpush1.bf16.msk.msra.mxu1 %vm4061_vm15, %v4625_v12  ;;  %vm3999_vm2 = vmpackc.low %vm398_vm10, %vm382_vm9  ;;  %1959 = vmatprep.mubr.f32.mxu0 %v5349_v46  ;;  %vm416_vm9 = vcmp.eq.s32.totalorder %v4961_v14, %v5316_v42  ;;  %vm432_vm10 = vcmp.eq.s32.totalorder %v4957_v13, %v5316_v42  ;;  %vm415_vm15 = vcmp.eq.s32.totalorder %v4961_v14, %v5328_v44 }
 0x11d   : > { %4000 = vmatprep.subr.msk.bf16.mxu0 %vm3999_vm2, %v4625_v12  ;;  %vm4063_vm5 = vmpackc.low %vm400_vm14, %vm384_vm13  ;;  %2048 = vmatprep.mubr.f32.mxu1 %v5349_v46  ;;  %vm429_vm13 = vcmp.eq.s32.totalorder %v4957_v13, %v5322_v43  ;;  %vm446_vm2 = vcmp.eq.s32.totalorder %v4988_v16, %v5308_v41 }
 0x11e   : > { %4064 = vmatprep.subr.msk.bf16.mxu1 %vm4063_vm5, %v4625_v12  ;;  %vm4001_vm8 = vmpackc.low %vm397_vm1, %vm381_vm0  ;;  %1960 = vmatmul.mubr.f32.gmra.mrb[2].mxu0 %v5368_v47  ;;  %vm431_vm0 = vcmp.eq.s32.totalorder %v4957_v13, %v5328_v44  ;;  %vm448_vm5 = vcmp.eq.s32.totalorder %v4988_v16, %v5316_v42 }
 0x11f   : > { %4002 = vmatpush1.bf16.msk.msra.mxu0 %vm4001_vm8, %v4625_v12  ;;  %vm4065_vm11 = vmpackc.low %vm399_vm4, %vm383_vm3  ;;  %2049 = vmatmul.mubr.f32.gmra.mrb[2].mxu1 %v5368_v47  ;;  %vm462_vm3 = vcmp.eq.s32.totalorder %v4986_v15, %v5308_v41  ;;  %vm445_vm8 = vcmp.eq.s32.totalorder %v4988_v16, %v5322_v43 }
 0x120   : > { %4066 = vmatpush1.bf16.msk.msra.mxu1 %vm4065_vm11, %v4625_v12  ;;  %vm4003_vm14 = vmpackc.low %vm430_vm7, %vm414_vm6  ;;  %1965 = vmatprep.mubr.f32.mxu0 %v5388_v48  ;;  %vm464_vm6 = vcmp.eq.s32.totalorder %v4986_v15, %v5316_v42  ;;  %vm447_vm11 = vcmp.eq.s32.totalorder %v4988_v16, %v5328_v44 }
 0x121   : > { %4004 = vmatprep.subr.msk.bf16.mxu0 %vm4003_vm14, %v4625_v12  ;;  %vm4067_vm1 = vmpackc.low %vm432_vm10, %vm416_vm9  ;;  %2054 = vmatprep.mubr.f32.mxu1 %v5388_v48  ;;  %vm461_vm9 = vcmp.eq.s32.totalorder %v4986_v15, %v5322_v43  ;;  %vm478_vm14 = vcmp.eq.s32.totalorder %v5012_v18, %v5308_v41 }
 0x122   : > { %4068 = vmatprep.subr.msk.bf16.mxu1 %vm4067_vm1, %v4625_v12  ;;  %vm4005_vm4 = vmpackc.low %vm429_vm13, %vm413_vm12  ;;  %1966 = vmatmul.mubr.f32.gmra.mrb[4].mxu0 %v5408_v49  ;;  %vm463_vm12 = vcmp.eq.s32.totalorder %v4986_v15, %v5328_v44  ;;  %vm480_vm1 = vcmp.eq.s32.totalorder %v5012_v18, %v5316_v42 }
 0x123   : > { %4006 = vmatpush1.bf16.msk.msra.mxu0 %vm4005_vm4, %v4625_v12  ;;  %vm4069_vm7 = vmpackc.low %vm431_vm0, %vm415_vm15  ;;  %2055 = vmatmul.mubr.f32.gmra.mrb[4].mxu1 %v5408_v49  ;;  %vm494_vm15 = vcmp.eq.s32.totalorder %v5010_v17, %v5308_v41  ;;  %vm477_vm4 = vcmp.eq.s32.totalorder %v5012_v18, %v5322_v43 }
 0x124   : > { %4070 = vmatpush1.bf16.msk.msra.mxu1 %vm4069_vm7, %v4625_v12  ;;  %vm4007_vm10 = vmpackc.low %vm462_vm3, %vm446_vm2  ;;  %1971 = vmatprep.mubr.f32.mxu0 %v5431_v50  ;;  %vm496_vm2 = vcmp.eq.s32.totalorder %v5010_v17, %v5316_v42  ;;  %vm479_vm7 = vcmp.eq.s32.totalorder %v5012_v18, %v5328_v44 }
 0x125   : > { %4008 = vmatprep.subr.msk.bf16.mxu0 %vm4007_vm10, %v4625_v12  ;;  %vm4071_vm13 = vmpackc.low %vm464_vm6, %vm448_vm5  ;;  %2060 = vmatprep.mubr.f32.mxu1 %v5431_v50  ;;  %vm493_vm5 = vcmp.eq.s32.totalorder %v5010_v17, %v5322_v43  ;;  %vm510_vm10 = vcmp.eq.s32.totalorder %v5036_v20, %v5308_v41 }
 0x126   : > { %4072 = vmatprep.subr.msk.bf16.mxu1 %vm4071_vm13, %v4625_v12  ;;  %vm4009_vm0 = vmpackc.low %vm461_vm9, %vm445_vm8  ;;  %1972 = vmatmul.mubr.f32.gmra.mrb[6].mxu0 %v5454_v51  ;;  %vm495_vm8 = vcmp.eq.s32.totalorder %v5010_v17, %v5328_v44  ;;  %vm512_vm13 = vcmp.eq.s32.totalorder %v5036_v20, %v5316_v42 }
 0x127   : > { %4010 = vmatpush1.bf16.msk.msra.mxu0 %vm4009_vm0, %v4625_v12  ;;  %vm4073_vm3 = vmpackc.low %vm463_vm12, %vm447_vm11  ;;  %2061 = vmatmul.mubr.f32.gmra.mrb[6].mxu1 %v5454_v51  ;;  %vm526_vm11 = vcmp.eq.s32.totalorder %v5034_v19, %v5308_v41  ;;  %vm509_vm0 = vcmp.eq.s32.totalorder %v5036_v20, %v5322_v43 }
 0x128   : > { %4074 = vmatpush1.bf16.msk.msra.mxu1 %vm4073_vm3, %v4625_v12  ;;  %vm4011_vm6 = vmpackc.low %vm494_vm15, %vm478_vm14  ;;  %2131 = vmatprep.mubr.f32.mxu0 %v4914_v2  ;;  %vm528_vm14 = vcmp.eq.s32.totalorder %v5034_v19, %v5316_v42  ;;  %vm511_vm3 = vcmp.eq.s32.totalorder %v5036_v20, %v5328_v44 }
 0x129   : > { %4012 = vmatprep.subr.msk.bf16.mxu0 %vm4011_vm6, %v4625_v12  ;;  %vm4075_vm9 = vmpackc.low %vm496_vm2, %vm480_vm1  ;;  %2220 = vmatprep.mubr.f32.mxu1 %v4914_v2  ;;  %vm525_vm1 = vcmp.eq.s32.totalorder %v5034_v19, %v5322_v43  ;;  %vm542_vm6 = vcmp.eq.s32.totalorder %v5060_v22, %v5308_v41  ;;  %v6220_v2 = vld [vmem:[#allocation4 + $0x38] sm:$0xff] }
 0x12a   : > { %4076 = vmatprep.subr.msk.bf16.mxu1 %vm4075_vm9, %v4625_v12  ;;  %vm4013_vm12 = vmpackc.low %vm493_vm5, %vm477_vm4  ;;  %vm527_vm4 = vcmp.eq.s32.totalorder %v5034_v19, %v5328_v44  ;;  %vm544_vm9 = vcmp.eq.s32.totalorder %v5060_v22, %v5316_v42 }
 0x12b   : > { %4014 = vmatpush1.bf16.msk.msra.mxu0 %vm4013_vm12, %v4625_v12  ;;  %vm4077_vm15 = vmpackc.low %vm495_vm8, %vm479_vm7  ;;  %vm558_vm7 = vcmp.eq.s32.totalorder %v5058_v21, %v5308_v41  ;;  %vm541_vm12 = vcmp.eq.s32.totalorder %v5060_v22, %v5322_v43 }
 0x12c   : > { %4078 = vmatpush1.bf16.msk.msra.mxu1 %vm4077_vm15, %v4625_v12  ;;  %vm4015_vm2 = vmpackc.low %vm526_vm11, %vm510_vm10  ;;  %vm560_vm10 = vcmp.eq.s32.totalorder %v5058_v21, %v5316_v42  ;;  %vm543_vm15 = vcmp.eq.s32.totalorder %v5060_v22, %v5328_v44 }
 0x12d   : > { %4016 = vmatprep.subr.msk.bf16.mxu0 %vm4015_vm2, %v4625_v12  ;;  %vm4079_vm5 = vmpackc.low %vm528_vm14, %vm512_vm13  ;;  %vm557_vm13 = vcmp.eq.s32.totalorder %v5058_v21, %v5322_v43  ;;  %vm574_vm2 = vcmp.eq.s32.totalorder %v5084_v24, %v5308_v41 }
 0x12e   : > { %4080 = vmatprep.subr.msk.bf16.mxu1 %vm4079_vm5, %v4625_v12  ;;  %vm4017_vm8 = vmpackc.low %vm525_vm1, %vm509_vm0  ;;  %vm559_vm0 = vcmp.eq.s32.totalorder %v5058_v21, %v5328_v44  ;;  %vm576_vm5 = vcmp.eq.s32.totalorder %v5084_v24, %v5316_v42 }
 0x12f   : > { %4018 = vmatpush1.bf16.msk.msra.mxu0 %vm4017_vm8, %v4625_v12  ;;  %vm4081_vm11 = vmpackc.low %vm527_vm4, %vm511_vm3  ;;  %vm590_vm3 = vcmp.eq.s32.totalorder %v5082_v23, %v5308_v41  ;;  %vm573_vm8 = vcmp.eq.s32.totalorder %v5084_v24, %v5322_v43 }
 0x130   : > { %4082 = vmatpush1.bf16.msk.msra.mxu1 %vm4081_vm11, %v4625_v12  ;;  %vm4019_vm14 = vmpackc.low %vm558_vm7, %vm542_vm6  ;;  %vm592_vm6 = vcmp.eq.s32.totalorder %v5082_v23, %v5316_v42  ;;  %vm575_vm11 = vcmp.eq.s32.totalorder %v5084_v24, %v5328_v44 }
 0x131   : > { %4020 = vmatprep.subr.msk.bf16.mxu0 %vm4019_vm14, %v4625_v12  ;;  %vm4083_vm1 = vmpackc.low %vm560_vm10, %vm544_vm9  ;;  %vm589_vm9 = vcmp.eq.s32.totalorder %v5082_v23, %v5322_v43  ;;  %vm606_vm14 = vcmp.eq.s32.totalorder %v5108_v26, %v5308_v41 }
 0x132   : > { %4084 = vmatprep.subr.msk.bf16.mxu1 %vm4083_vm1, %v4625_v12  ;;  %vm4021_vm4 = vmpackc.low %vm557_vm13, %vm541_vm12  ;;  %vm591_vm12 = vcmp.eq.s32.totalorder %v5082_v23, %v5328_v44  ;;  %vm608_vm1 = vcmp.eq.s32.totalorder %v5108_v26, %v5316_v42 }
 0x133   : > { %4022 = vmatpush1.bf16.msk.msra.mxu0 %vm4021_vm4, %v4625_v12  ;;  %vm4085_vm7 = vmpackc.low %vm559_vm0, %vm543_vm15  ;;  %vm622_vm15 = vcmp.eq.s32.totalorder %v5106_v25, %v5308_v41  ;;  %vm605_vm4 = vcmp.eq.s32.totalorder %v5108_v26, %v5322_v43 }
 0x134   : > { %4086 = vmatpush1.bf16.msk.msra.mxu1 %vm4085_vm7, %v4625_v12  ;;  %vm4023_vm10 = vmpackc.low %vm590_vm3, %vm574_vm2  ;;  %vm624_vm2 = vcmp.eq.s32.totalorder %v5106_v25, %v5316_v42  ;;  %vm607_vm7 = vcmp.eq.s32.totalorder %v5108_v26, %v5328_v44 }
 0x135   : > { %4024 = vmatprep.subr.msk.bf16.mxu0 %vm4023_vm10, %v4625_v12  ;;  %vm4087_vm13 = vmpackc.low %vm592_vm6, %vm576_vm5  ;;  %vm621_vm5 = vcmp.eq.s32.totalorder %v5106_v25, %v5322_v43  ;;  %vm638_vm10 = vcmp.eq.s32.totalorder %v5132_v28, %v5308_v41 }
 0x136   : > { %4088 = vmatprep.subr.msk.bf16.mxu1 %vm4087_vm13, %v4625_v12  ;;  %vm4025_vm0 = vmpackc.low %vm589_vm9, %vm573_vm8  ;;  %vm623_vm8 = vcmp.eq.s32.totalorder %v5106_v25, %v5328_v44  ;;  %vm640_vm13 = vcmp.eq.s32.totalorder %v5132_v28, %v5316_v42 }
 0x137   : > { %4026 = vmatpush1.bf16.msk.msra.mxu0 %vm4025_vm0, %v4625_v12  ;;  %vm4089_vm3 = vmpackc.low %vm591_vm12, %vm575_vm11  ;;  %vm654_vm11 = vcmp.eq.s32.totalorder %v5130_v27, %v5308_v41  ;;  %vm637_vm0 = vcmp.eq.s32.totalorder %v5132_v28, %v5322_v43 }
 0x138   : > { %4090 = vmatpush1.bf16.msk.msra.mxu1 %vm4089_vm3, %v4625_v12  ;;  %vm4027_vm6 = vmpackc.low %vm622_vm15, %vm606_vm14  ;;  %vm656_vm14 = vcmp.eq.s32.totalorder %v5130_v27, %v5316_v42  ;;  %vm639_vm3 = vcmp.eq.s32.totalorder %v5132_v28, %v5328_v44 }
 0x139   : > { %4028 = vmatprep.subr.msk.bf16.mxu0 %vm4027_vm6, %v4625_v12  ;;  %vm4091_vm9 = vmpackc.low %vm624_vm2, %vm608_vm1  ;;  %vm653_vm1 = vcmp.eq.s32.totalorder %v5130_v27, %v5322_v43  ;;  %vm670_vm6 = vcmp.eq.s32.totalorder %v5156_v30, %v5308_v41 }
 0x13a   : > { %4092 = vmatprep.subr.msk.bf16.mxu1 %vm4091_vm9, %v4625_v12  ;;  %vm4029_vm12 = vmpackc.low %vm621_vm5, %vm605_vm4  ;;  %vm655_vm4 = vcmp.eq.s32.totalorder %v5130_v27, %v5328_v44  ;;  %vm672_vm9 = vcmp.eq.s32.totalorder %v5156_v30, %v5316_v42 }
 0x13b   : > { %4030 = vmatpush1.bf16.msk.msra.mxu0 %vm4029_vm12, %v4625_v12  ;;  %vm4093_vm15 = vmpackc.low %vm623_vm8, %vm607_vm7  ;;  %vm686_vm7 = vcmp.eq.s32.totalorder %v5154_v29, %v5308_v41  ;;  %vm669_vm12 = vcmp.eq.s32.totalorder %v5156_v30, %v5322_v43 }
 0x13c   : > { %4094 = vmatpush1.bf16.msk.msra.mxu1 %vm4093_vm15, %v4625_v12  ;;  %vm4031_vm2 = vmpackc.low %vm654_vm11, %vm638_vm10  ;;  %vm688_vm10 = vcmp.eq.s32.totalorder %v5154_v29, %v5316_v42  ;;  %vm671_vm15 = vcmp.eq.s32.totalorder %v5156_v30, %v5328_v44 }
 0x13d   : > { %4032 = vmatprep.subr.msk.bf16.mxu0 %vm4031_vm2, %v4625_v12  ;;  %vm4095_vm5 = vmpackc.low %vm656_vm14, %vm640_vm13  ;;  %vm685_vm13 = vcmp.eq.s32.totalorder %v5154_v29, %v5322_v43  ;;  %vm702_vm2 = vcmp.eq.s32.totalorder %v5180_v32, %v5308_v41 }
 0x13e   : > { %4096 = vmatprep.subr.msk.bf16.mxu1 %vm4095_vm5, %v4625_v12  ;;  %vm4033_vm8 = vmpackc.low %vm653_vm1, %vm637_vm0  ;;  %vm687_vm0 = vcmp.eq.s32.totalorder %v5154_v29, %v5328_v44  ;;  %vm704_vm5 = vcmp.eq.s32.totalorder %v5180_v32, %v5316_v42 }
 0x13f   : > { %4034 = vmatpush1.bf16.msk.msra.mxu0 %vm4033_vm8, %v4625_v12  ;;  %vm4097_vm11 = vmpackc.low %vm655_vm4, %vm639_vm3  ;;  %vm718_vm3 = vcmp.eq.s32.totalorder %v5178_v31, %v5308_v41  ;;  %vm701_vm8 = vcmp.eq.s32.totalorder %v5180_v32, %v5322_v43 }
 0x140   : > { %4098 = vmatpush1.bf16.msk.msra.mxu1 %vm4097_vm11, %v4625_v12  ;;  %vm4035_vm14 = vmpackc.low %vm686_vm7, %vm670_vm6  ;;  %vm720_vm6 = vcmp.eq.s32.totalorder %v5178_v31, %v5316_v42  ;;  %vm703_vm11 = vcmp.eq.s32.totalorder %v5180_v32, %v5328_v44 }
 0x141   : > { %4036 = vmatprep.subr.msk.bf16.mxu0 %vm4035_vm14, %v4625_v12  ;;  %vm4099_vm1 = vmpackc.low %vm688_vm10, %vm672_vm9  ;;  %vm717_vm9 = vcmp.eq.s32.totalorder %v5178_v31, %v5322_v43  ;;  %vm734_vm14 = vcmp.eq.s32.totalorder %v5204_v34, %v5308_v41 }
 0x142   : > { %4100 = vmatprep.subr.msk.bf16.mxu1 %vm4099_vm1, %v4625_v12  ;;  %vm4037_vm4 = vmpackc.low %vm685_vm13, %vm669_vm12  ;;  %vm719_vm12 = vcmp.eq.s32.totalorder %v5178_v31, %v5328_v44  ;;  %vm736_vm1 = vcmp.eq.s32.totalorder %v5204_v34, %v5316_v42 }
 0x143   : > { %4038 = vmatpush1.bf16.msk.msra.mxu0 %vm4037_vm4, %v4625_v12  ;;  %vm4101_vm7 = vmpackc.low %vm687_vm0, %vm671_vm15  ;;  %vm750_vm15 = vcmp.eq.s32.totalorder %v5202_v33, %v5308_v41  ;;  %vm733_vm4 = vcmp.eq.s32.totalorder %v5204_v34, %v5322_v43 }
 0x144   : > { %4102 = vmatpush1.bf16.msk.msra.mxu1 %vm4101_vm7, %v4625_v12  ;;  %vm4039_vm10 = vmpackc.low %vm718_vm3, %vm702_vm2  ;;  %vm752_vm2 = vcmp.eq.s32.totalorder %v5202_v33, %v5316_v42  ;;  %vm735_vm7 = vcmp.eq.s32.totalorder %v5204_v34, %v5328_v44 }
 0x145   : > { %4040 = vmatprep.subr.msk.bf16.mxu0 %vm4039_vm10, %v4625_v12  ;;  %vm4103_vm13 = vmpackc.low %vm720_vm6, %vm704_vm5  ;;  %vm749_vm5 = vcmp.eq.s32.totalorder %v5202_v33, %v5322_v43  ;;  %vm766_vm10 = vcmp.eq.s32.totalorder %v5228_v36, %v5308_v41 }
 0x146   : > { %4104 = vmatprep.subr.msk.bf16.mxu1 %vm4103_vm13, %v4625_v12  ;;  %vm4041_vm0 = vmpackc.low %vm717_vm9, %vm701_vm8  ;;  %vm751_vm8 = vcmp.eq.s32.totalorder %v5202_v33, %v5328_v44  ;;  %vm768_vm13 = vcmp.eq.s32.totalorder %v5228_v36, %v5316_v42 }
 0x147   : > { %4042 = vmatpush1.bf16.msk.msra.mxu0 %vm4041_vm0, %v4625_v12  ;;  %vm4105_vm3 = vmpackc.low %vm719_vm12, %vm703_vm11  ;;  %vm782_vm11 = vcmp.eq.s32.totalorder %v5226_v35, %v5308_v41  ;;  %vm765_vm0 = vcmp.eq.s32.totalorder %v5228_v36, %v5322_v43 }
 0x148   : > { %4106 = vmatpush1.bf16.msk.msra.mxu1 %vm4105_vm3, %v4625_v12  ;;  %vm4043_vm6 = vmpackc.low %vm750_vm15, %vm734_vm14  ;;  %vm784_vm14 = vcmp.eq.s32.totalorder %v5226_v35, %v5316_v42  ;;  %vm767_vm3 = vcmp.eq.s32.totalorder %v5228_v36, %v5328_v44 }
 0x149   : > { %4044 = vmatprep.subr.msk.bf16.mxu0 %vm4043_vm6, %v4625_v12  ;;  %vm4107_vm9 = vmpackc.low %vm752_vm2, %vm736_vm1  ;;  %vm781_vm1 = vcmp.eq.s32.totalorder %v5226_v35, %v5322_v43  ;;  %vm798_vm6 = vcmp.eq.s32.totalorder %v5252_v38, %v5308_v41 }
 0x14a   : > { %4108 = vmatprep.subr.msk.bf16.mxu1 %vm4107_vm9, %v4625_v12  ;;  %vm4045_vm12 = vmpackc.low %vm749_vm5, %vm733_vm4  ;;  %vm783_vm4 = vcmp.eq.s32.totalorder %v5226_v35, %v5328_v44  ;;  %vm800_vm9 = vcmp.eq.s32.totalorder %v5252_v38, %v5316_v42 }
 0x14b   : > { %4046 = vmatpush1.bf16.msk.msra.mxu0 %vm4045_vm12, %v4625_v12  ;;  %vm4109_vm15 = vmpackc.low %vm751_vm8, %vm735_vm7  ;;  %vm814_vm7 = vcmp.eq.s32.totalorder %v5250_v37, %v5308_v41  ;;  %vm797_vm12 = vcmp.eq.s32.totalorder %v5252_v38, %v5322_v43 }
 0x14c   : > { %4110 = vmatpush1.bf16.msk.msra.mxu1 %vm4109_vm15, %v4625_v12  ;;  %vm4047_vm2 = vmpackc.low %vm782_vm11, %vm766_vm10  ;;  %vm816_vm10 = vcmp.eq.s32.totalorder %v5250_v37, %v5316_v42  ;;  %vm799_vm15 = vcmp.eq.s32.totalorder %v5252_v38, %v5328_v44 }
 0x14d   : > { %4048 = vmatprep.subr.msk.bf16.mxu0 %vm4047_vm2, %v4625_v12  ;;  %vm4111_vm5 = vmpackc.low %vm784_vm14, %vm768_vm13  ;;  %vm813_vm13 = vcmp.eq.s32.totalorder %v5250_v37, %v5322_v43  ;;  %vm830_vm2 = vcmp.eq.s32.totalorder %v5276_v40, %v5308_v41 }
 0x14e   : > { %4112 = vmatprep.subr.msk.bf16.mxu1 %vm4111_vm5, %v4625_v12  ;;  %vm4049_vm8 = vmpackc.low %vm781_vm1, %vm765_vm0  ;;  %vm815_vm0 = vcmp.eq.s32.totalorder %v5250_v37, %v5328_v44  ;;  %vm832_vm5 = vcmp.eq.s32.totalorder %v5276_v40, %v5316_v42 }
 0x14f   : > { %4050 = vmatpush1.bf16.msk.msra.mxu0 %vm4049_vm8, %v4625_v12  ;;  %vm4113_vm11 = vmpackc.low %vm783_vm4, %vm767_vm3  ;;  %vm846_vm3 = vcmp.eq.s32.totalorder %v5274_v39, %v5308_v41  ;;  %vm829_vm8 = vcmp.eq.s32.totalorder %v5276_v40, %v5322_v43 }
 0x150   : > { %4114 = vmatpush1.bf16.msk.msra.mxu1 %vm4113_vm11, %v4625_v12  ;;  %vm4051_vm14 = vmpackc.low %vm814_vm7, %vm798_vm6  ;;  %vm848_vm6 = vcmp.eq.s32.totalorder %v5274_v39, %v5316_v42  ;;  %vm831_vm11 = vcmp.eq.s32.totalorder %v5276_v40, %v5328_v44 }
 0x151   : > { %4052 = vmatprep.subr.msk.bf16.mxu0 %vm4051_vm14, %v4625_v12  ;;  %vm4115_vm1 = vmpackc.low %vm816_vm10, %vm800_vm9  ;;  %vm845_vm9 = vcmp.eq.s32.totalorder %v5274_v39, %v5322_v43  ;;  %vm370_vm14 = vcmp.eq.s32.totalorder %v4932_v10, %v5715_v52 }
 0x152   : > { %4116 = vmatprep.subr.msk.bf16.mxu1 %vm4115_vm1, %v4625_v12  ;;  %vm4053_vm4 = vmpackc.low %vm813_vm13, %vm797_vm12  ;;  %vm847_vm12 = vcmp.eq.s32.totalorder %v5274_v39, %v5328_v44 }
 0x153   : > { %4054 = vmatpush1.bf16.msk.msra.mxu0 %vm4053_vm4, %v4625_v12  ;;  %vm4117_vm7 = vmpackc.low %vm815_vm0, %vm799_vm15  ;;  %vm372_vm0 = vcmp.eq.s32.totalorder %v4932_v10, %v5723_v53 }
 0x154   : > { %4118 = vmatpush1.bf16.msk.msra.mxu1 %vm4117_vm7, %v4625_v12  ;;  %vm4055_vm10 = vmpackc.low %vm846_vm3, %vm830_vm2  ;;  %vm354_vm2 = vcmp.eq.s32.totalorder %v4922_v7, %v5715_v52  ;;  %vm369_vm3 = vcmp.eq.s32.totalorder %v4932_v10, %v5729_v54 }
 0x155   : > { %4056 = vmatprep.subr.msk.bf16.mxu0 %vm4055_vm10, %v4625_v12  ;;  %vm4119_vm13 = vmpackc.low %vm848_vm6, %vm832_vm5  ;;  %vm356_vm5 = vcmp.eq.s32.totalorder %v4922_v7, %v5723_v53  ;;  %vm371_vm6 = vcmp.eq.s32.totalorder %v4932_v10, %v5735_v55  ;;  %vm402_vm10 = vcmp.eq.s32.totalorder %v4930_v9, %v5715_v52 }
 0x156   : > { %4120 = vmatprep.subr.msk.bf16.mxu1 %vm4119_vm13, %v4625_v12  ;;  %vm4057_vm15 = vmpackc.low %vm845_vm9, %vm829_vm8  ;;  %vm353_vm8 = vcmp.eq.s32.totalorder %v4922_v7, %v5729_v54  ;;  %vm386_vm9 = vcmp.eq.s32.totalorder %v4920_v6, %v5715_v52  ;;  %vm388_vm13 = vcmp.eq.s32.totalorder %v4920_v6, %v5723_v53 }
 0x157   : > { %4058 = vmatpush1.bf16.msk.msra.mxu0 %vm4057_vm15, %v4625_v12  ;;  %vm4121_vm1 = vmpackc.low %vm847_vm12, %vm831_vm11  ;;  %vm355_vm12 = vcmp.eq.s32.totalorder %v4922_v7, %v5735_v55 }
 0x158   : > { %4122 = vmatpush1.bf16.msk.msra.mxu1 %vm4121_vm1, %v4625_v12  ;;  %vm4123_vm4 = vmpackc.low %vm370_vm14, %vm354_vm2  ;;  %vm404_vm14 = vcmp.eq.s32.totalorder %v4930_v9, %v5723_v53  ;;  %vm401_vm1 = vcmp.eq.s32.totalorder %v4930_v9, %v5729_v54 }
 0x159   : > { %4124 = vmatprep.subr.msk.bf16.mxu0 %vm4123_vm4, %v4625_v12  ;;  %vm4187_vm7 = vmpackc.low %vm372_vm0, %vm356_vm5  ;;  %vm385_vm0 = vcmp.eq.s32.totalorder %v4920_v6, %v5729_v54  ;;  %vm403_vm4 = vcmp.eq.s32.totalorder %v4930_v9, %v5735_v55 }
 0x15a   : > { %4188 = vmatprep.subr.msk.bf16.mxu1 %vm4187_vm7, %v4625_v12  ;;  %2132 = vmatmul.mubr.f32.vlgmr.msra.gmra.mrb[8].mxu0 %v5333_v45  ;;  %vm4125_vm11 = vmpackc.low %vm369_vm3, %vm353_vm8  ;;  %vm387_vm3 = vcmp.eq.s32.totalorder %v4920_v6, %v5735_v55  ;;  %vm434_vm7 = vcmp.eq.s32.totalorder %v4957_v13, %v5715_v52 }
 0x15b   : > { %2221 = vmatmul.mubr.f32.vlgmr.msra.gmra.mrb[8].mxu1 %v5333_v45  ;;  %4126 = vmatpush1.bf16.msk.msra.mxu0 %vm4125_vm11, %v4625_v12  ;;  %vm4189_vm15 = vmpackc.low %vm371_vm6, %vm355_vm12  ;;  %vm418_vm6 = vcmp.eq.s32.totalorder %v4961_v14, %v5715_v52  ;;  %vm417_vm12 = vcmp.eq.s32.totalorder %v4961_v14, %v5729_v54 }
 0x15c   : > { %4190 = vmatpush1.bf16.msk.msra.mxu1 %vm4189_vm15, %v4625_v12  ;;  %vm4127_vm2 = vmpackc.low %vm402_vm10, %vm386_vm9  ;;  %2137 = vmatprep.mubr.f32.mxu0 %v5349_v46  ;;  %vm420_vm9 = vcmp.eq.s32.totalorder %v4961_v14, %v5723_v53  ;;  %vm436_vm10 = vcmp.eq.s32.totalorder %v4957_v13, %v5723_v53  ;;  %vm419_vm15 = vcmp.eq.s32.totalorder %v4961_v14, %v5735_v55 }
 0x15d   : > { %4128 = vmatprep.subr.msk.bf16.mxu0 %vm4127_vm2, %v4625_v12  ;;  %vm4191_vm5 = vmpackc.low %vm404_vm14, %vm388_vm13  ;;  %2226 = vmatprep.mubr.f32.mxu1 %v5349_v46  ;;  %vm433_vm13 = vcmp.eq.s32.totalorder %v4957_v13, %v5729_v54  ;;  %vm450_vm2 = vcmp.eq.s32.totalorder %v4988_v16, %v5715_v52 }
 0x15e   : > { %4192 = vmatprep.subr.msk.bf16.mxu1 %vm4191_vm5, %v4625_v12  ;;  %vm4129_vm8 = vmpackc.low %vm401_vm1, %vm385_vm0  ;;  %2138 = vmatmul.mubr.f32.gmra.mrb[10].mxu0 %v5368_v47  ;;  %vm435_vm0 = vcmp.eq.s32.totalorder %v4957_v13, %v5735_v55  ;;  %vm452_vm5 = vcmp.eq.s32.totalorder %v4988_v16, %v5723_v53 }
 0x15f   : > { %4130 = vmatpush1.bf16.msk.msra.mxu0 %vm4129_vm8, %v4625_v12  ;;  %vm4193_vm11 = vmpackc.low %vm403_vm4, %vm387_vm3  ;;  %2227 = vmatmul.mubr.f32.gmra.mrb[10].mxu1 %v5368_v47  ;;  %vm466_vm3 = vcmp.eq.s32.totalorder %v4986_v15, %v5715_v52  ;;  %vm449_vm8 = vcmp.eq.s32.totalorder %v4988_v16, %v5729_v54 }
 0x160   : > { %4194 = vmatpush1.bf16.msk.msra.mxu1 %vm4193_vm11, %v4625_v12  ;;  %vm4131_vm14 = vmpackc.low %vm434_vm7, %vm418_vm6  ;;  %2143 = vmatprep.mubr.f32.mxu0 %v5388_v48  ;;  %vm468_vm6 = vcmp.eq.s32.totalorder %v4986_v15, %v5723_v53  ;;  %vm451_vm11 = vcmp.eq.s32.totalorder %v4988_v16, %v5735_v55 }
 0x161   : > { %4132 = vmatprep.subr.msk.bf16.mxu0 %vm4131_vm14, %v4625_v12  ;;  %vm4195_vm1 = vmpackc.low %vm436_vm10, %vm420_vm9  ;;  %2232 = vmatprep.mubr.f32.mxu1 %v5388_v48  ;;  %vm465_vm9 = vcmp.eq.s32.totalorder %v4986_v15, %v5729_v54  ;;  %vm482_vm14 = vcmp.eq.s32.totalorder %v5012_v18, %v5715_v52 }
 0x162   : > { %4196 = vmatprep.subr.msk.bf16.mxu1 %vm4195_vm1, %v4625_v12  ;;  %vm4133_vm4 = vmpackc.low %vm433_vm13, %vm417_vm12  ;;  %2144 = vmatmul.mubr.f32.gmra.mrb[12].mxu0 %v5408_v49  ;;  %vm467_vm12 = vcmp.eq.s32.totalorder %v4986_v15, %v5735_v55  ;;  %vm484_vm1 = vcmp.eq.s32.totalorder %v5012_v18, %v5723_v53 }
 0x163   : > { %4134 = vmatpush1.bf16.msk.msra.mxu0 %vm4133_vm4, %v4625_v12  ;;  %vm4197_vm7 = vmpackc.low %vm435_vm0, %vm419_vm15  ;;  %2233 = vmatmul.mubr.f32.gmra.mrb[12].mxu1 %v5408_v49  ;;  %vm498_vm15 = vcmp.eq.s32.totalorder %v5010_v17, %v5715_v52  ;;  %vm481_vm4 = vcmp.eq.s32.totalorder %v5012_v18, %v5729_v54 }
 0x164   : > { %4198 = vmatpush1.bf16.msk.msra.mxu1 %vm4197_vm7, %v4625_v12  ;;  %vm4135_vm10 = vmpackc.low %vm466_vm3, %vm450_vm2  ;;  %2149 = vmatprep.mubr.f32.mxu0 %v5431_v50  ;;  %vm500_vm2 = vcmp.eq.s32.totalorder %v5010_v17, %v5723_v53  ;;  %vm483_vm7 = vcmp.eq.s32.totalorder %v5012_v18, %v5735_v55 }
 0x165   : > { %4136 = vmatprep.subr.msk.bf16.mxu0 %vm4135_vm10, %v4625_v12  ;;  %vm4199_vm13 = vmpackc.low %vm468_vm6, %vm452_vm5  ;;  %2238 = vmatprep.mubr.f32.mxu1 %v5431_v50  ;;  %vm497_vm5 = vcmp.eq.s32.totalorder %v5010_v17, %v5729_v54  ;;  %vm514_vm10 = vcmp.eq.s32.totalorder %v5036_v20, %v5715_v52 }
 0x166   : > { %4200 = vmatprep.subr.msk.bf16.mxu1 %vm4199_vm13, %v4625_v12  ;;  %vm4137_vm0 = vmpackc.low %vm465_vm9, %vm449_vm8  ;;  %2150 = vmatmul.mubr.f32.gmra.mrb[14].mxu0 %v5454_v51  ;;  %vm499_vm8 = vcmp.eq.s32.totalorder %v5010_v17, %v5735_v55  ;;  %vm516_vm13 = vcmp.eq.s32.totalorder %v5036_v20, %v5723_v53 }
 0x167   : > { %4138 = vmatpush1.bf16.msk.msra.mxu0 %vm4137_vm0, %v4625_v12  ;;  %vm4201_vm3 = vmpackc.low %vm467_vm12, %vm451_vm11  ;;  %2239 = vmatmul.mubr.f32.gmra.mrb[14].mxu1 %v5454_v51  ;;  %vm530_vm11 = vcmp.eq.s32.totalorder %v5034_v19, %v5715_v52  ;;  %vm513_vm0 = vcmp.eq.s32.totalorder %v5036_v20, %v5729_v54 }
 0x168   : > { %4202 = vmatpush1.bf16.msk.msra.mxu1 %vm4201_vm3, %v4625_v12  ;;  %vm4139_vm6 = vmpackc.low %vm498_vm15, %vm482_vm14  ;;  %2309 = vmatprep.mubr.f32.mxu0 %v5845_v56  ;;  %vm532_vm14 = vcmp.eq.s32.totalorder %v5034_v19, %v5723_v53  ;;  %vm515_vm3 = vcmp.eq.s32.totalorder %v5036_v20, %v5735_v55 }
 0x169   : > { %4140 = vmatprep.subr.msk.bf16.mxu0 %vm4139_vm6, %v4625_v12  ;;  %vm4203_vm9 = vmpackc.low %vm500_vm2, %vm484_vm1  ;;  %2398 = vmatprep.mubr.f32.mxu1 %v5845_v56  ;;  %vm529_vm1 = vcmp.eq.s32.totalorder %v5034_v19, %v5729_v54  ;;  %vm546_vm6 = vcmp.eq.s32.totalorder %v5060_v22, %v5715_v52 }
 0x16a   : > { %4204 = vmatprep.subr.msk.bf16.mxu1 %vm4203_vm9, %v4625_v12  ;;  %vm4141_vm12 = vmpackc.low %vm497_vm5, %vm481_vm4  ;;  %vm531_vm4 = vcmp.eq.s32.totalorder %v5034_v19, %v5735_v55  ;;  %vm548_vm9 = vcmp.eq.s32.totalorder %v5060_v22, %v5723_v53 }
 0x16b   : > { %4142 = vmatpush1.bf16.msk.msra.mxu0 %vm4141_vm12, %v4625_v12  ;;  %vm4205_vm15 = vmpackc.low %vm499_vm8, %vm483_vm7  ;;  %vm562_vm7 = vcmp.eq.s32.totalorder %v5058_v21, %v5715_v52  ;;  %vm545_vm12 = vcmp.eq.s32.totalorder %v5060_v22, %v5729_v54 }
 0x16c   : > { %4206 = vmatpush1.bf16.msk.msra.mxu1 %vm4205_vm15, %v4625_v12  ;;  %vm4143_vm2 = vmpackc.low %vm530_vm11, %vm514_vm10  ;;  %vm564_vm10 = vcmp.eq.s32.totalorder %v5058_v21, %v5723_v53  ;;  %vm547_vm15 = vcmp.eq.s32.totalorder %v5060_v22, %v5735_v55 }
 0x16d   : > { %4144 = vmatprep.subr.msk.bf16.mxu0 %vm4143_vm2, %v4625_v12  ;;  %vm4207_vm5 = vmpackc.low %vm532_vm14, %vm516_vm13  ;;  %vm561_vm13 = vcmp.eq.s32.totalorder %v5058_v21, %v5729_v54  ;;  %vm578_vm2 = vcmp.eq.s32.totalorder %v5084_v24, %v5715_v52 }
 0x16e   : > { %4208 = vmatprep.subr.msk.bf16.mxu1 %vm4207_vm5, %v4625_v12  ;;  %vm4145_vm8 = vmpackc.low %vm529_vm1, %vm513_vm0  ;;  %vm563_vm0 = vcmp.eq.s32.totalorder %v5058_v21, %v5735_v55  ;;  %vm580_vm5 = vcmp.eq.s32.totalorder %v5084_v24, %v5723_v53 }
 0x16f   : > { %4146 = vmatpush1.bf16.msk.msra.mxu0 %vm4145_vm8, %v4625_v12  ;;  %vm4209_vm11 = vmpackc.low %vm531_vm4, %vm515_vm3  ;;  %vm594_vm3 = vcmp.eq.s32.totalorder %v5082_v23, %v5715_v52  ;;  %vm577_vm8 = vcmp.eq.s32.totalorder %v5084_v24, %v5729_v54 }
 0x170   : > { %4210 = vmatpush1.bf16.msk.msra.mxu1 %vm4209_vm11, %v4625_v12  ;;  %vm4147_vm14 = vmpackc.low %vm562_vm7, %vm546_vm6  ;;  %vm596_vm6 = vcmp.eq.s32.totalorder %v5082_v23, %v5723_v53  ;;  %vm579_vm11 = vcmp.eq.s32.totalorder %v5084_v24, %v5735_v55 }
 0x171   : > { %4148 = vmatprep.subr.msk.bf16.mxu0 %vm4147_vm14, %v4625_v12  ;;  %vm4211_vm1 = vmpackc.low %vm564_vm10, %vm548_vm9  ;;  %vm593_vm9 = vcmp.eq.s32.totalorder %v5082_v23, %v5729_v54  ;;  %vm610_vm14 = vcmp.eq.s32.totalorder %v5108_v26, %v5715_v52 }
 0x172   : > { %4212 = vmatprep.subr.msk.bf16.mxu1 %vm4211_vm1, %v4625_v12  ;;  %vm4149_vm4 = vmpackc.low %vm561_vm13, %vm545_vm12  ;;  %vm595_vm12 = vcmp.eq.s32.totalorder %v5082_v23, %v5735_v55  ;;  %vm612_vm1 = vcmp.eq.s32.totalorder %v5108_v26, %v5723_v53 }
 0x173   : > { %4150 = vmatpush1.bf16.msk.msra.mxu0 %vm4149_vm4, %v4625_v12  ;;  %vm4213_vm7 = vmpackc.low %vm563_vm0, %vm547_vm15  ;;  %vm626_vm15 = vcmp.eq.s32.totalorder %v5106_v25, %v5715_v52  ;;  %vm609_vm4 = vcmp.eq.s32.totalorder %v5108_v26, %v5729_v54 }
 0x174   : > { %4214 = vmatpush1.bf16.msk.msra.mxu1 %vm4213_vm7, %v4625_v12  ;;  %vm4151_vm10 = vmpackc.low %vm594_vm3, %vm578_vm2  ;;  %vm628_vm2 = vcmp.eq.s32.totalorder %v5106_v25, %v5723_v53  ;;  %vm611_vm7 = vcmp.eq.s32.totalorder %v5108_v26, %v5735_v55 }
 0x175   : > { %4152 = vmatprep.subr.msk.bf16.mxu0 %vm4151_vm10, %v4625_v12  ;;  %vm4215_vm13 = vmpackc.low %vm596_vm6, %vm580_vm5  ;;  %vm625_vm5 = vcmp.eq.s32.totalorder %v5106_v25, %v5729_v54  ;;  %vm642_vm10 = vcmp.eq.s32.totalorder %v5132_v28, %v5715_v52 }
 0x176   : > { %4216 = vmatprep.subr.msk.bf16.mxu1 %vm4215_vm13, %v4625_v12  ;;  %vm4153_vm0 = vmpackc.low %vm593_vm9, %vm577_vm8  ;;  %vm627_vm8 = vcmp.eq.s32.totalorder %v5106_v25, %v5735_v55  ;;  %vm644_vm13 = vcmp.eq.s32.totalorder %v5132_v28, %v5723_v53 }
 0x177   : > { %4154 = vmatpush1.bf16.msk.msra.mxu0 %vm4153_vm0, %v4625_v12  ;;  %vm4217_vm3 = vmpackc.low %vm595_vm12, %vm579_vm11  ;;  %vm658_vm11 = vcmp.eq.s32.totalorder %v5130_v27, %v5715_v52  ;;  %vm641_vm0 = vcmp.eq.s32.totalorder %v5132_v28, %v5729_v54 }
 0x178   : > { %4218 = vmatpush1.bf16.msk.msra.mxu1 %vm4217_vm3, %v4625_v12  ;;  %vm4155_vm6 = vmpackc.low %vm626_vm15, %vm610_vm14  ;;  %vm660_vm14 = vcmp.eq.s32.totalorder %v5130_v27, %v5723_v53  ;;  %vm643_vm3 = vcmp.eq.s32.totalorder %v5132_v28, %v5735_v55 }
 0x179   : > { %4156 = vmatprep.subr.msk.bf16.mxu0 %vm4155_vm6, %v4625_v12  ;;  %vm4219_vm9 = vmpackc.low %vm628_vm2, %vm612_vm1  ;;  %vm657_vm1 = vcmp.eq.s32.totalorder %v5130_v27, %v5729_v54  ;;  %vm674_vm6 = vcmp.eq.s32.totalorder %v5156_v30, %v5715_v52 }
 0x17a   : > { %4220 = vmatprep.subr.msk.bf16.mxu1 %vm4219_vm9, %v4625_v12  ;;  %vm4157_vm12 = vmpackc.low %vm625_vm5, %vm609_vm4  ;;  %vm659_vm4 = vcmp.eq.s32.totalorder %v5130_v27, %v5735_v55  ;;  %vm676_vm9 = vcmp.eq.s32.totalorder %v5156_v30, %v5723_v53 }
 0x17b   : > { %4158 = vmatpush1.bf16.msk.msra.mxu0 %vm4157_vm12, %v4625_v12  ;;  %vm4221_vm15 = vmpackc.low %vm627_vm8, %vm611_vm7  ;;  %vm690_vm7 = vcmp.eq.s32.totalorder %v5154_v29, %v5715_v52  ;;  %vm673_vm12 = vcmp.eq.s32.totalorder %v5156_v30, %v5729_v54 }
 0x17c   : > { %4222 = vmatpush1.bf16.msk.msra.mxu1 %vm4221_vm15, %v4625_v12  ;;  %vm4159_vm2 = vmpackc.low %vm658_vm11, %vm642_vm10  ;;  %vm692_vm10 = vcmp.eq.s32.totalorder %v5154_v29, %v5723_v53  ;;  %vm675_vm15 = vcmp.eq.s32.totalorder %v5156_v30, %v5735_v55 }
 0x17d   : > { %4160 = vmatprep.subr.msk.bf16.mxu0 %vm4159_vm2, %v4625_v12  ;;  %vm4223_vm5 = vmpackc.low %vm660_vm14, %vm644_vm13  ;;  %vm689_vm13 = vcmp.eq.s32.totalorder %v5154_v29, %v5729_v54  ;;  %vm706_vm2 = vcmp.eq.s32.totalorder %v5180_v32, %v5715_v52 }
 0x17e   : > { %4224 = vmatprep.subr.msk.bf16.mxu1 %vm4223_vm5, %v4625_v12  ;;  %vm4161_vm8 = vmpackc.low %vm657_vm1, %vm641_vm0  ;;  %vm691_vm0 = vcmp.eq.s32.totalorder %v5154_v29, %v5735_v55  ;;  %vm708_vm5 = vcmp.eq.s32.totalorder %v5180_v32, %v5723_v53 }
 0x17f   : > { %4162 = vmatpush1.bf16.msk.msra.mxu0 %vm4161_vm8, %v4625_v12  ;;  %vm4225_vm11 = vmpackc.low %vm659_vm4, %vm643_vm3  ;;  %vm722_vm3 = vcmp.eq.s32.totalorder %v5178_v31, %v5715_v52  ;;  %vm705_vm8 = vcmp.eq.s32.totalorder %v5180_v32, %v5729_v54 }
 0x180   : > { %4226 = vmatpush1.bf16.msk.msra.mxu1 %vm4225_vm11, %v4625_v12  ;;  %vm4163_vm14 = vmpackc.low %vm690_vm7, %vm674_vm6  ;;  %vm724_vm6 = vcmp.eq.s32.totalorder %v5178_v31, %v5723_v53  ;;  %vm707_vm11 = vcmp.eq.s32.totalorder %v5180_v32, %v5735_v55 }
 0x181   : > { %4164 = vmatprep.subr.msk.bf16.mxu0 %vm4163_vm14, %v4625_v12  ;;  %vm4227_vm1 = vmpackc.low %vm692_vm10, %vm676_vm9  ;;  %vm721_vm9 = vcmp.eq.s32.totalorder %v5178_v31, %v5729_v54  ;;  %vm738_vm14 = vcmp.eq.s32.totalorder %v5204_v34, %v5715_v52 }
 0x182   : > { %4228 = vmatprep.subr.msk.bf16.mxu1 %vm4227_vm1, %v4625_v12  ;;  %vm4165_vm4 = vmpackc.low %vm689_vm13, %vm673_vm12  ;;  %vm723_vm12 = vcmp.eq.s32.totalorder %v5178_v31, %v5735_v55  ;;  %vm740_vm1 = vcmp.eq.s32.totalorder %v5204_v34, %v5723_v53 }
 0x183   : > { %4166 = vmatpush1.bf16.msk.msra.mxu0 %vm4165_vm4, %v4625_v12  ;;  %vm4229_vm7 = vmpackc.low %vm691_vm0, %vm675_vm15  ;;  %vm754_vm15 = vcmp.eq.s32.totalorder %v5202_v33, %v5715_v52  ;;  %vm737_vm4 = vcmp.eq.s32.totalorder %v5204_v34, %v5729_v54 }
 0x184   : > { %4230 = vmatpush1.bf16.msk.msra.mxu1 %vm4229_vm7, %v4625_v12  ;;  %vm4167_vm10 = vmpackc.low %vm722_vm3, %vm706_vm2  ;;  %vm756_vm2 = vcmp.eq.s32.totalorder %v5202_v33, %v5723_v53  ;;  %vm739_vm7 = vcmp.eq.s32.totalorder %v5204_v34, %v5735_v55 }
 0x185   : > { %4168 = vmatprep.subr.msk.bf16.mxu0 %vm4167_vm10, %v4625_v12  ;;  %vm4231_vm13 = vmpackc.low %vm724_vm6, %vm708_vm5  ;;  %vm753_vm5 = vcmp.eq.s32.totalorder %v5202_v33, %v5729_v54  ;;  %vm770_vm10 = vcmp.eq.s32.totalorder %v5228_v36, %v5715_v52 }
 0x186   : > { %4232 = vmatprep.subr.msk.bf16.mxu1 %vm4231_vm13, %v4625_v12  ;;  %vm4169_vm0 = vmpackc.low %vm721_vm9, %vm705_vm8  ;;  %vm755_vm8 = vcmp.eq.s32.totalorder %v5202_v33, %v5735_v55  ;;  %vm772_vm13 = vcmp.eq.s32.totalorder %v5228_v36, %v5723_v53 }
 0x187   : > { %4170 = vmatpush1.bf16.msk.msra.mxu0 %vm4169_vm0, %v4625_v12  ;;  %vm4233_vm3 = vmpackc.low %vm723_vm12, %vm707_vm11  ;;  %vm786_vm11 = vcmp.eq.s32.totalorder %v5226_v35, %v5715_v52  ;;  %vm769_vm0 = vcmp.eq.s32.totalorder %v5228_v36, %v5729_v54 }
 0x188   : > { %4234 = vmatpush1.bf16.msk.msra.mxu1 %vm4233_vm3, %v4625_v12  ;;  %vm4171_vm6 = vmpackc.low %vm754_vm15, %vm738_vm14  ;;  %vm788_vm14 = vcmp.eq.s32.totalorder %v5226_v35, %v5723_v53  ;;  %vm771_vm3 = vcmp.eq.s32.totalorder %v5228_v36, %v5735_v55 }
 0x189   : > { %4172 = vmatprep.subr.msk.bf16.mxu0 %vm4171_vm6, %v4625_v12  ;;  %vm4235_vm9 = vmpackc.low %vm756_vm2, %vm740_vm1  ;;  %vm785_vm1 = vcmp.eq.s32.totalorder %v5226_v35, %v5729_v54  ;;  %vm802_vm6 = vcmp.eq.s32.totalorder %v5252_v38, %v5715_v52 }
 0x18a   : > { %4236 = vmatprep.subr.msk.bf16.mxu1 %vm4235_vm9, %v4625_v12  ;;  %vm4173_vm12 = vmpackc.low %vm753_vm5, %vm737_vm4  ;;  %vm787_vm4 = vcmp.eq.s32.totalorder %v5226_v35, %v5735_v55  ;;  %vm804_vm9 = vcmp.eq.s32.totalorder %v5252_v38, %v5723_v53 }
 0x18b   : > { %4174 = vmatpush1.bf16.msk.msra.mxu0 %vm4173_vm12, %v4625_v12  ;;  %vm4237_vm15 = vmpackc.low %vm755_vm8, %vm739_vm7  ;;  %vm818_vm7 = vcmp.eq.s32.totalorder %v5250_v37, %v5715_v52  ;;  %vm801_vm12 = vcmp.eq.s32.totalorder %v5252_v38, %v5729_v54 }
 0x18c   : > { %4238 = vmatpush1.bf16.msk.msra.mxu1 %vm4237_vm15, %v4625_v12  ;;  %vm4175_vm2 = vmpackc.low %vm786_vm11, %vm770_vm10  ;;  %vm820_vm10 = vcmp.eq.s32.totalorder %v5250_v37, %v5723_v53  ;;  %vm803_vm15 = vcmp.eq.s32.totalorder %v5252_v38, %v5735_v55 }
 0x18d   : > { %4176 = vmatprep.subr.msk.bf16.mxu0 %vm4175_vm2, %v4625_v12  ;;  %vm4239_vm5 = vmpackc.low %vm788_vm14, %vm772_vm13  ;;  %vm817_vm13 = vcmp.eq.s32.totalorder %v5250_v37, %v5729_v54  ;;  %vm834_vm2 = vcmp.eq.s32.totalorder %v5276_v40, %v5715_v52 }
 0x18e   : > { %4240 = vmatprep.subr.msk.bf16.mxu1 %vm4239_vm5, %v4625_v12  ;;  %vm4177_vm8 = vmpackc.low %vm785_vm1, %vm769_vm0  ;;  %vm819_vm0 = vcmp.eq.s32.totalorder %v5250_v37, %v5735_v55  ;;  %vm836_vm5 = vcmp.eq.s32.totalorder %v5276_v40, %v5723_v53 }
 0x18f   : > { %4178 = vmatpush1.bf16.msk.msra.mxu0 %vm4177_vm8, %v4625_v12  ;;  %vm4241_vm11 = vmpackc.low %vm787_vm4, %vm771_vm3  ;;  %vm850_vm3 = vcmp.eq.s32.totalorder %v5274_v39, %v5715_v52  ;;  %vm833_vm8 = vcmp.eq.s32.totalorder %v5276_v40, %v5729_v54 }
 0x190   : > { %4242 = vmatpush1.bf16.msk.msra.mxu1 %vm4241_vm11, %v4625_v12  ;;  %vm4179_vm14 = vmpackc.low %vm818_vm7, %vm802_vm6  ;;  %vm852_vm6 = vcmp.eq.s32.totalorder %v5274_v39, %v5723_v53  ;;  %vm835_vm11 = vcmp.eq.s32.totalorder %v5276_v40, %v5735_v55 }
 0x191   : > { %4180 = vmatprep.subr.msk.bf16.mxu0 %vm4179_vm14, %v4625_v12  ;;  %vm4243_vm1 = vmpackc.low %vm820_vm10, %vm804_vm9  ;;  %vm849_vm9 = vcmp.eq.s32.totalorder %v5274_v39, %v5729_v54  ;;  %vm374_vm14 = vcmp.eq.s32.totalorder %v4932_v10, %v6071_v57 }
 0x192   : > { %4244 = vmatprep.subr.msk.bf16.mxu1 %vm4243_vm1, %v4625_v12  ;;  %vm4181_vm4 = vmpackc.low %vm817_vm13, %vm801_vm12  ;;  %vm851_vm12 = vcmp.eq.s32.totalorder %v5274_v39, %v5735_v55 }
 0x193   : > { %4182 = vmatpush1.bf16.msk.msra.mxu0 %vm4181_vm4, %v4625_v12  ;;  %vm4245_vm7 = vmpackc.low %vm819_vm0, %vm803_vm15  ;;  %vm376_vm0 = vcmp.eq.s32.totalorder %v4932_v10, %v6079_v58 }
 0x194   : > { %4246 = vmatpush1.bf16.msk.msra.mxu1 %vm4245_vm7, %v4625_v12  ;;  %vm4183_vm10 = vmpackc.low %vm850_vm3, %vm834_vm2  ;;  %vm358_vm2 = vcmp.eq.s32.totalorder %v4922_v7, %v6071_v57  ;;  %vm373_vm3 = vcmp.eq.s32.totalorder %v4932_v10, %v6085_v59 }
 0x195   : > { %4184 = vmatprep.subr.msk.bf16.mxu0 %vm4183_vm10, %v4625_v12  ;;  %vm4247_vm13 = vmpackc.low %vm852_vm6, %vm836_vm5  ;;  %vm360_vm5 = vcmp.eq.s32.totalorder %v4922_v7, %v6079_v58  ;;  %vm375_vm6 = vcmp.eq.s32.totalorder %v4932_v10, %v6091_v60  ;;  %vm406_vm10 = vcmp.eq.s32.totalorder %v4930_v9, %v6071_v57 }
 0x196   : > { %4248 = vmatprep.subr.msk.bf16.mxu1 %vm4247_vm13, %v4625_v12  ;;  %vm4185_vm15 = vmpackc.low %vm849_vm9, %vm833_vm8  ;;  %vm357_vm8 = vcmp.eq.s32.totalorder %v4922_v7, %v6085_v59  ;;  %vm390_vm9 = vcmp.eq.s32.totalorder %v4920_v6, %v6071_v57  ;;  %vm392_vm13 = vcmp.eq.s32.totalorder %v4920_v6, %v6079_v58 }
 0x197   : > { %4186 = vmatpush1.bf16.msk.msra.mxu0 %vm4185_vm15, %v4625_v12  ;;  %vm4249_vm1 = vmpackc.low %vm851_vm12, %vm835_vm11  ;;  %vm359_vm12 = vcmp.eq.s32.totalorder %v4922_v7, %v6091_v60 }
 0x198   : > { %4250 = vmatpush1.bf16.msk.msra.mxu1 %vm4249_vm1, %v4625_v12  ;;  %vm4251_vm4 = vmpackc.low %vm374_vm14, %vm358_vm2  ;;  %vm408_vm14 = vcmp.eq.s32.totalorder %v4930_v9, %v6079_v58  ;;  %vm405_vm1 = vcmp.eq.s32.totalorder %v4930_v9, %v6085_v59 }
 0x199   : > { %4252 = vmatprep.subr.msk.bf16.mxu0 %vm4251_vm4, %v4625_v12  ;;  %vm4315_vm7 = vmpackc.low %vm376_vm0, %vm360_vm5  ;;  %vm389_vm0 = vcmp.eq.s32.totalorder %v4920_v6, %v6085_v59  ;;  %vm407_vm4 = vcmp.eq.s32.totalorder %v4930_v9, %v6091_v60 }
 0x19a   : > { %4316 = vmatprep.subr.msk.bf16.mxu1 %vm4315_vm7, %v4625_v12  ;;  %2310 = vmatmul.mubr.f32.vlgmr.msra.gmra.mrb[16].mxu0 %v6111_v61  ;;  %vm4253_vm11 = vmpackc.low %vm373_vm3, %vm357_vm8  ;;  %vm391_vm3 = vcmp.eq.s32.totalorder %v4920_v6, %v6091_v60  ;;  %vm438_vm7 = vcmp.eq.s32.totalorder %v4957_v13, %v6071_v57 }
 0x19b   : > { %2399 = vmatmul.mubr.f32.vlgmr.msra.gmra.mrb[16].mxu1 %v6111_v61  ;;  %4254 = vmatpush1.bf16.msk.msra.mxu0 %vm4253_vm11, %v4625_v12  ;;  %vm4317_vm15 = vmpackc.low %vm375_vm6, %vm359_vm12  ;;  %vm422_vm6 = vcmp.eq.s32.totalorder %v4961_v14, %v6071_v57  ;;  %vm421_vm12 = vcmp.eq.s32.totalorder %v4961_v14, %v6085_v59 }
 0x19c   : > { %4318 = vmatpush1.bf16.msk.msra.mxu1 %vm4317_vm15, %v4625_v12  ;;  %vm4255_vm2 = vmpackc.low %vm406_vm10, %vm390_vm9  ;;  %2315 = vmatprep.mubr.f32.mxu0 %v6137_v62  ;;  %vm424_vm9 = vcmp.eq.s32.totalorder %v4961_v14, %v6079_v58  ;;  %vm440_vm10 = vcmp.eq.s32.totalorder %v4957_v13, %v6079_v58  ;;  %vm423_vm15 = vcmp.eq.s32.totalorder %v4961_v14, %v6091_v60 }
 0x19d   : > { %4256 = vmatprep.subr.msk.bf16.mxu0 %vm4255_vm2, %v4625_v12  ;;  %vm4319_vm5 = vmpackc.low %vm408_vm14, %vm392_vm13  ;;  %2404 = vmatprep.mubr.f32.mxu1 %v6137_v62  ;;  %vm437_vm13 = vcmp.eq.s32.totalorder %v4957_v13, %v6085_v59  ;;  %vm454_vm2 = vcmp.eq.s32.totalorder %v4988_v16, %v6071_v57 }
 0x19e   : > { %4320 = vmatprep.subr.msk.bf16.mxu1 %vm4319_vm5, %v4625_v12  ;;  %vm4257_vm8 = vmpackc.low %vm405_vm1, %vm389_vm0  ;;  %2316 = vmatmul.mubr.f32.gmra.mrb[18].mxu0 %v6151_v63  ;;  %vm439_vm0 = vcmp.eq.s32.totalorder %v4957_v13, %v6091_v60  ;;  %vm456_vm5 = vcmp.eq.s32.totalorder %v4988_v16, %v6079_v58 }
 0x19f   : > { %4258 = vmatpush1.bf16.msk.msra.mxu0 %vm4257_vm8, %v4625_v12  ;;  %vm4321_vm11 = vmpackc.low %vm407_vm4, %vm391_vm3  ;;  %2405 = vmatmul.mubr.f32.gmra.mrb[18].mxu1 %v6151_v63  ;;  %vm470_vm3 = vcmp.eq.s32.totalorder %v4986_v15, %v6071_v57  ;;  %vm453_vm8 = vcmp.eq.s32.totalorder %v4988_v16, %v6085_v59 }
 0x1a0   : > { %4322 = vmatpush1.bf16.msk.msra.mxu1 %vm4321_vm11, %v4625_v12  ;;  %vm4259_vm14 = vmpackc.low %vm438_vm7, %vm422_vm6  ;;  %2321 = vmatprep.mubr.f32.mxu0 %v6174_v0  ;;  %vm472_vm6 = vcmp.eq.s32.totalorder %v4986_v15, %v6079_v58  ;;  %vm455_vm11 = vcmp.eq.s32.totalorder %v4988_v16, %v6091_v60 }
 0x1a1   : > { %4260 = vmatprep.subr.msk.bf16.mxu0 %vm4259_vm14, %v4625_v12  ;;  %vm4323_vm1 = vmpackc.low %vm440_vm10, %vm424_vm9  ;;  %2410 = vmatprep.mubr.f32.mxu1 %v6174_v0  ;;  %vm469_vm9 = vcmp.eq.s32.totalorder %v4986_v15, %v6085_v59  ;;  %vm486_vm14 = vcmp.eq.s32.totalorder %v5012_v18, %v6071_v57 }
 0x1a2   : > { %4324 = vmatprep.subr.msk.bf16.mxu1 %vm4323_vm1, %v4625_v12  ;;  %vm4261_vm4 = vmpackc.low %vm437_vm13, %vm421_vm12  ;;  %2322 = vmatmul.mubr.f32.gmra.mrb[20].mxu0 %v6197_v1  ;;  %vm471_vm12 = vcmp.eq.s32.totalorder %v4986_v15, %v6091_v60  ;;  %vm488_vm1 = vcmp.eq.s32.totalorder %v5012_v18, %v6079_v58 }
 0x1a3   : > { %4262 = vmatpush1.bf16.msk.msra.mxu0 %vm4261_vm4, %v4625_v12  ;;  %vm4325_vm7 = vmpackc.low %vm439_vm0, %vm423_vm15  ;;  %2411 = vmatmul.mubr.f32.gmra.mrb[20].mxu1 %v6197_v1  ;;  %vm502_vm15 = vcmp.eq.s32.totalorder %v5010_v17, %v6071_v57  ;;  %vm485_vm4 = vcmp.eq.s32.totalorder %v5012_v18, %v6085_v59 }
 0x1a4   : > { %4326 = vmatpush1.bf16.msk.msra.mxu1 %vm4325_vm7, %v4625_v12  ;;  %vm4263_vm10 = vmpackc.low %vm470_vm3, %vm454_vm2  ;;  %2327 = vmatprep.mubr.f32.mxu0 %v6220_v2  ;;  %vm504_vm2 = vcmp.eq.s32.totalorder %v5010_v17, %v6079_v58  ;;  %vm487_vm7 = vcmp.eq.s32.totalorder %v5012_v18, %v6091_v60 }
 0x1a5   : > { %4264 = vmatprep.subr.msk.bf16.mxu0 %vm4263_vm10, %v4625_v12  ;;  %vm4327_vm13 = vmpackc.low %vm472_vm6, %vm456_vm5  ;;  %2416 = vmatprep.mubr.f32.mxu1 %v6220_v2  ;;  %vm501_vm5 = vcmp.eq.s32.totalorder %v5010_v17, %v6085_v59  ;;  %vm518_vm10 = vcmp.eq.s32.totalorder %v5036_v20, %v6071_v57 }
 0x1a6   : > { %4328 = vmatprep.subr.msk.bf16.mxu1 %vm4327_vm13, %v4625_v12  ;;  %vm4265_vm0 = vmpackc.low %vm469_vm9, %vm453_vm8  ;;  %2328 = vmatmul.mubr.f32.gmra.mrb[22].mxu0 %v6243_v4  ;;  %vm503_vm8 = vcmp.eq.s32.totalorder %v5010_v17, %v6091_v60  ;;  %vm520_vm13 = vcmp.eq.s32.totalorder %v5036_v20, %v6079_v58 }
 0x1a7   : > { %4266 = vmatpush1.bf16.msk.msra.mxu0 %vm4265_vm0, %v4625_v12  ;;  %vm4329_vm3 = vmpackc.low %vm471_vm12, %vm455_vm11  ;;  %2417 = vmatmul.mubr.f32.gmra.mrb[22].mxu1 %v6243_v4  ;;  %vm534_vm11 = vcmp.eq.s32.totalorder %v5034_v19, %v6071_v57  ;;  %vm517_vm0 = vcmp.eq.s32.totalorder %v5036_v20, %v6085_v59 }
 0x1a8   : > { %4330 = vmatpush1.bf16.msk.msra.mxu1 %vm4329_vm3, %v4625_v12  ;;  %vm4267_vm6 = vmpackc.low %vm502_vm15, %vm486_vm14  ;;  %2487 = vmatprep.mubr.f32.mxu0 %v5845_v56  ;;  %vm536_vm14 = vcmp.eq.s32.totalorder %v5034_v19, %v6079_v58  ;;  %vm519_vm3 = vcmp.eq.s32.totalorder %v5036_v20, %v6091_v60 }
 0x1a9   : > { %4268 = vmatprep.subr.msk.bf16.mxu0 %vm4267_vm6, %v4625_v12  ;;  %vm4331_vm9 = vmpackc.low %vm504_vm2, %vm488_vm1  ;;  %2576 = vmatprep.mubr.f32.mxu1 %v5845_v56  ;;  %vm533_vm1 = vcmp.eq.s32.totalorder %v5034_v19, %v6085_v59  ;;  %vm550_vm6 = vcmp.eq.s32.totalorder %v5060_v22, %v6071_v57 }
 0x1aa   : > { %4332 = vmatprep.subr.msk.bf16.mxu1 %vm4331_vm9, %v4625_v12  ;;  %vm4269_vm12 = vmpackc.low %vm501_vm5, %vm485_vm4  ;;  %vm535_vm4 = vcmp.eq.s32.totalorder %v5034_v19, %v6091_v60  ;;  %vm552_vm9 = vcmp.eq.s32.totalorder %v5060_v22, %v6079_v58 }
 0x1ab   : > { %4270 = vmatpush1.bf16.msk.msra.mxu0 %vm4269_vm12, %v4625_v12  ;;  %vm4333_vm15 = vmpackc.low %vm503_vm8, %vm487_vm7  ;;  %vm566_vm7 = vcmp.eq.s32.totalorder %v5058_v21, %v6071_v57  ;;  %vm549_vm12 = vcmp.eq.s32.totalorder %v5060_v22, %v6085_v59 }
 0x1ac   : > { %4334 = vmatpush1.bf16.msk.msra.mxu1 %vm4333_vm15, %v4625_v12  ;;  %vm4271_vm2 = vmpackc.low %vm534_vm11, %vm518_vm10  ;;  %vm568_vm10 = vcmp.eq.s32.totalorder %v5058_v21, %v6079_v58  ;;  %vm551_vm15 = vcmp.eq.s32.totalorder %v5060_v22, %v6091_v60 }
 0x1ad   : > { %4272 = vmatprep.subr.msk.bf16.mxu0 %vm4271_vm2, %v4625_v12  ;;  %vm4335_vm5 = vmpackc.low %vm536_vm14, %vm520_vm13  ;;  %vm565_vm13 = vcmp.eq.s32.totalorder %v5058_v21, %v6085_v59  ;;  %vm582_vm2 = vcmp.eq.s32.totalorder %v5084_v24, %v6071_v57 }
 0x1ae   : > { %4336 = vmatprep.subr.msk.bf16.mxu1 %vm4335_vm5, %v4625_v12  ;;  %vm4273_vm8 = vmpackc.low %vm533_vm1, %vm517_vm0  ;;  %vm567_vm0 = vcmp.eq.s32.totalorder %v5058_v21, %v6091_v60  ;;  %vm584_vm5 = vcmp.eq.s32.totalorder %v5084_v24, %v6079_v58 }
 0x1af   : > { %4274 = vmatpush1.bf16.msk.msra.mxu0 %vm4273_vm8, %v4625_v12  ;;  %vm4337_vm11 = vmpackc.low %vm535_vm4, %vm519_vm3  ;;  %vm598_vm3 = vcmp.eq.s32.totalorder %v5082_v23, %v6071_v57  ;;  %vm581_vm8 = vcmp.eq.s32.totalorder %v5084_v24, %v6085_v59 }
 0x1b0   : > { %4338 = vmatpush1.bf16.msk.msra.mxu1 %vm4337_vm11, %v4625_v12  ;;  %vm4275_vm14 = vmpackc.low %vm566_vm7, %vm550_vm6  ;;  %vm600_vm6 = vcmp.eq.s32.totalorder %v5082_v23, %v6079_v58  ;;  %vm583_vm11 = vcmp.eq.s32.totalorder %v5084_v24, %v6091_v60 }
 0x1b1   : > { %4276 = vmatprep.subr.msk.bf16.mxu0 %vm4275_vm14, %v4625_v12  ;;  %vm4339_vm1 = vmpackc.low %vm568_vm10, %vm552_vm9  ;;  %vm597_vm9 = vcmp.eq.s32.totalorder %v5082_v23, %v6085_v59  ;;  %vm614_vm14 = vcmp.eq.s32.totalorder %v5108_v26, %v6071_v57 }
 0x1b2   : > { %4340 = vmatprep.subr.msk.bf16.mxu1 %vm4339_vm1, %v4625_v12  ;;  %vm4277_vm4 = vmpackc.low %vm565_vm13, %vm549_vm12  ;;  %vm599_vm12 = vcmp.eq.s32.totalorder %v5082_v23, %v6091_v60  ;;  %vm616_vm1 = vcmp.eq.s32.totalorder %v5108_v26, %v6079_v58 }
 0x1b3   : > { %4278 = vmatpush1.bf16.msk.msra.mxu0 %vm4277_vm4, %v4625_v12  ;;  %vm4341_vm7 = vmpackc.low %vm567_vm0, %vm551_vm15  ;;  %vm630_vm15 = vcmp.eq.s32.totalorder %v5106_v25, %v6071_v57  ;;  %vm613_vm4 = vcmp.eq.s32.totalorder %v5108_v26, %v6085_v59 }
 0x1b4   : > { %4342 = vmatpush1.bf16.msk.msra.mxu1 %vm4341_vm7, %v4625_v12  ;;  %vm4279_vm10 = vmpackc.low %vm598_vm3, %vm582_vm2  ;;  %vm632_vm2 = vcmp.eq.s32.totalorder %v5106_v25, %v6079_v58  ;;  %vm615_vm7 = vcmp.eq.s32.totalorder %v5108_v26, %v6091_v60 }
 0x1b5   : > { %4280 = vmatprep.subr.msk.bf16.mxu0 %vm4279_vm10, %v4625_v12  ;;  %vm4343_vm13 = vmpackc.low %vm600_vm6, %vm584_vm5  ;;  %vm629_vm5 = vcmp.eq.s32.totalorder %v5106_v25, %v6085_v59  ;;  %vm646_vm10 = vcmp.eq.s32.totalorder %v5132_v28, %v6071_v57 }
 0x1b6   : > { %4344 = vmatprep.subr.msk.bf16.mxu1 %vm4343_vm13, %v4625_v12  ;;  %vm4281_vm0 = vmpackc.low %vm597_vm9, %vm581_vm8  ;;  %vm631_vm8 = vcmp.eq.s32.totalorder %v5106_v25, %v6091_v60  ;;  %vm648_vm13 = vcmp.eq.s32.totalorder %v5132_v28, %v6079_v58 }
 0x1b7   : > { %4282 = vmatpush1.bf16.msk.msra.mxu0 %vm4281_vm0, %v4625_v12  ;;  %vm4345_vm3 = vmpackc.low %vm599_vm12, %vm583_vm11  ;;  %vm662_vm11 = vcmp.eq.s32.totalorder %v5130_v27, %v6071_v57  ;;  %vm645_vm0 = vcmp.eq.s32.totalorder %v5132_v28, %v6085_v59 }
 0x1b8   : > { %4346 = vmatpush1.bf16.msk.msra.mxu1 %vm4345_vm3, %v4625_v12  ;;  %vm4283_vm6 = vmpackc.low %vm630_vm15, %vm614_vm14  ;;  %vm664_vm14 = vcmp.eq.s32.totalorder %v5130_v27, %v6079_v58  ;;  %vm647_vm3 = vcmp.eq.s32.totalorder %v5132_v28, %v6091_v60 }
 0x1b9   : > { %4284 = vmatprep.subr.msk.bf16.mxu0 %vm4283_vm6, %v4625_v12  ;;  %vm4347_vm9 = vmpackc.low %vm632_vm2, %vm616_vm1  ;;  %vm661_vm1 = vcmp.eq.s32.totalorder %v5130_v27, %v6085_v59  ;;  %vm678_vm6 = vcmp.eq.s32.totalorder %v5156_v30, %v6071_v57 }
 0x1ba   : > { %4348 = vmatprep.subr.msk.bf16.mxu1 %vm4347_vm9, %v4625_v12  ;;  %vm4285_vm12 = vmpackc.low %vm629_vm5, %vm613_vm4  ;;  %vm663_vm4 = vcmp.eq.s32.totalorder %v5130_v27, %v6091_v60  ;;  %vm680_vm9 = vcmp.eq.s32.totalorder %v5156_v30, %v6079_v58 }
 0x1bb   : > { %4286 = vmatpush1.bf16.msk.msra.mxu0 %vm4285_vm12, %v4625_v12  ;;  %vm4349_vm15 = vmpackc.low %vm631_vm8, %vm615_vm7  ;;  %vm694_vm7 = vcmp.eq.s32.totalorder %v5154_v29, %v6071_v57  ;;  %vm677_vm12 = vcmp.eq.s32.totalorder %v5156_v30, %v6085_v59 }
 0x1bc   : > { %4350 = vmatpush1.bf16.msk.msra.mxu1 %vm4349_vm15, %v4625_v12  ;;  %vm4287_vm2 = vmpackc.low %vm662_vm11, %vm646_vm10  ;;  %vm696_vm10 = vcmp.eq.s32.totalorder %v5154_v29, %v6079_v58  ;;  %vm679_vm15 = vcmp.eq.s32.totalorder %v5156_v30, %v6091_v60 }
 0x1bd   : > { %4288 = vmatprep.subr.msk.bf16.mxu0 %vm4287_vm2, %v4625_v12  ;;  %vm4351_vm5 = vmpackc.low %vm664_vm14, %vm648_vm13  ;;  %vm693_vm13 = vcmp.eq.s32.totalorder %v5154_v29, %v6085_v59  ;;  %vm710_vm2 = vcmp.eq.s32.totalorder %v5180_v32, %v6071_v57 }
 0x1be   : > { %4352 = vmatprep.subr.msk.bf16.mxu1 %vm4351_vm5, %v4625_v12  ;;  %vm4289_vm8 = vmpackc.low %vm661_vm1, %vm645_vm0  ;;  %vm695_vm0 = vcmp.eq.s32.totalorder %v5154_v29, %v6091_v60  ;;  %vm712_vm5 = vcmp.eq.s32.totalorder %v5180_v32, %v6079_v58 }
 0x1bf   : > { %4290 = vmatpush1.bf16.msk.msra.mxu0 %vm4289_vm8, %v4625_v12  ;;  %vm4353_vm11 = vmpackc.low %vm663_vm4, %vm647_vm3  ;;  %vm726_vm3 = vcmp.eq.s32.totalorder %v5178_v31, %v6071_v57  ;;  %vm709_vm8 = vcmp.eq.s32.totalorder %v5180_v32, %v6085_v59 }
 0x1c0   : > { %4354 = vmatpush1.bf16.msk.msra.mxu1 %vm4353_vm11, %v4625_v12  ;;  %vm4291_vm14 = vmpackc.low %vm694_vm7, %vm678_vm6  ;;  %vm728_vm6 = vcmp.eq.s32.totalorder %v5178_v31, %v6079_v58  ;;  %vm711_vm11 = vcmp.eq.s32.totalorder %v5180_v32, %v6091_v60 }
 0x1c1   : > { %4292 = vmatprep.subr.msk.bf16.mxu0 %vm4291_vm14, %v4625_v12  ;;  %vm4355_vm1 = vmpackc.low %vm696_vm10, %vm680_vm9  ;;  %vm725_vm9 = vcmp.eq.s32.totalorder %v5178_v31, %v6085_v59  ;;  %vm742_vm14 = vcmp.eq.s32.totalorder %v5204_v34, %v6071_v57 }
 0x1c2   : > { %4356 = vmatprep.subr.msk.bf16.mxu1 %vm4355_vm1, %v4625_v12  ;;  %vm4293_vm4 = vmpackc.low %vm693_vm13, %vm677_vm12  ;;  %vm727_vm12 = vcmp.eq.s32.totalorder %v5178_v31, %v6091_v60  ;;  %vm744_vm1 = vcmp.eq.s32.totalorder %v5204_v34, %v6079_v58 }
 0x1c3   : > { %4294 = vmatpush1.bf16.msk.msra.mxu0 %vm4293_vm4, %v4625_v12  ;;  %vm4357_vm7 = vmpackc.low %vm695_vm0, %vm679_vm15  ;;  %vm758_vm15 = vcmp.eq.s32.totalorder %v5202_v33, %v6071_v57  ;;  %vm741_vm4 = vcmp.eq.s32.totalorder %v5204_v34, %v6085_v59 }
 0x1c4   : > { %4358 = vmatpush1.bf16.msk.msra.mxu1 %vm4357_vm7, %v4625_v12  ;;  %vm4295_vm10 = vmpackc.low %vm726_vm3, %vm710_vm2  ;;  %vm760_vm2 = vcmp.eq.s32.totalorder %v5202_v33, %v6079_v58  ;;  %vm743_vm7 = vcmp.eq.s32.totalorder %v5204_v34, %v6091_v60 }
 0x1c5   : > { %4296 = vmatprep.subr.msk.bf16.mxu0 %vm4295_vm10, %v4625_v12  ;;  %vm4359_vm13 = vmpackc.low %vm728_vm6, %vm712_vm5  ;;  %vm757_vm5 = vcmp.eq.s32.totalorder %v5202_v33, %v6085_v59  ;;  %vm774_vm10 = vcmp.eq.s32.totalorder %v5228_v36, %v6071_v57 }
 0x1c6   : > { %4360 = vmatprep.subr.msk.bf16.mxu1 %vm4359_vm13, %v4625_v12  ;;  %vm4297_vm0 = vmpackc.low %vm725_vm9, %vm709_vm8  ;;  %vm759_vm8 = vcmp.eq.s32.totalorder %v5202_v33, %v6091_v60  ;;  %vm776_vm13 = vcmp.eq.s32.totalorder %v5228_v36, %v6079_v58 }
 0x1c7   : > { %4298 = vmatpush1.bf16.msk.msra.mxu0 %vm4297_vm0, %v4625_v12  ;;  %vm4361_vm3 = vmpackc.low %vm727_vm12, %vm711_vm11  ;;  %vm790_vm11 = vcmp.eq.s32.totalorder %v5226_v35, %v6071_v57  ;;  %vm773_vm0 = vcmp.eq.s32.totalorder %v5228_v36, %v6085_v59 }
 0x1c8   : > { %4362 = vmatpush1.bf16.msk.msra.mxu1 %vm4361_vm3, %v4625_v12  ;;  %vm4299_vm6 = vmpackc.low %vm758_vm15, %vm742_vm14  ;;  %vm792_vm14 = vcmp.eq.s32.totalorder %v5226_v35, %v6079_v58  ;;  %vm775_vm3 = vcmp.eq.s32.totalorder %v5228_v36, %v6091_v60 }
 0x1c9   : > { %4300 = vmatprep.subr.msk.bf16.mxu0 %vm4299_vm6, %v4625_v12  ;;  %vm4363_vm9 = vmpackc.low %vm760_vm2, %vm744_vm1  ;;  %vm789_vm1 = vcmp.eq.s32.totalorder %v5226_v35, %v6085_v59  ;;  %vm806_vm6 = vcmp.eq.s32.totalorder %v5252_v38, %v6071_v57 }
 0x1ca   : > { %4364 = vmatprep.subr.msk.bf16.mxu1 %vm4363_vm9, %v4625_v12  ;;  %vm4301_vm12 = vmpackc.low %vm757_vm5, %vm741_vm4  ;;  %vm791_vm4 = vcmp.eq.s32.totalorder %v5226_v35, %v6091_v60  ;;  %vm808_vm9 = vcmp.eq.s32.totalorder %v5252_v38, %v6079_v58 }
 0x1cb   : > { %4302 = vmatpush1.bf16.msk.msra.mxu0 %vm4301_vm12, %v4625_v12  ;;  %vm4365_vm15 = vmpackc.low %vm759_vm8, %vm743_vm7  ;;  %vm822_vm7 = vcmp.eq.s32.totalorder %v5250_v37, %v6071_v57  ;;  %vm805_vm12 = vcmp.eq.s32.totalorder %v5252_v38, %v6085_v59 }
 0x1cc   : > { %4366 = vmatpush1.bf16.msk.msra.mxu1 %vm4365_vm15, %v4625_v12  ;;  %vm4303_vm2 = vmpackc.low %vm790_vm11, %vm774_vm10  ;;  %vm824_vm10 = vcmp.eq.s32.totalorder %v5250_v37, %v6079_v58  ;;  %vm807_vm15 = vcmp.eq.s32.totalorder %v5252_v38, %v6091_v60 }
 0x1cd   : > { %4304 = vmatprep.subr.msk.bf16.mxu0 %vm4303_vm2, %v4625_v12  ;;  %vm4367_vm5 = vmpackc.low %vm792_vm14, %vm776_vm13  ;;  %vm821_vm13 = vcmp.eq.s32.totalorder %v5250_v37, %v6085_v59  ;;  %vm838_vm2 = vcmp.eq.s32.totalorder %v5276_v40, %v6071_v57 }
 0x1ce   : > { %4368 = vmatprep.subr.msk.bf16.mxu1 %vm4367_vm5, %v4625_v12  ;;  %vm4305_vm8 = vmpackc.low %vm789_vm1, %vm773_vm0  ;;  %vm823_vm0 = vcmp.eq.s32.totalorder %v5250_v37, %v6091_v60  ;;  %vm840_vm5 = vcmp.eq.s32.totalorder %v5276_v40, %v6079_v58 }
 0x1cf   : > { %4306 = vmatpush1.bf16.msk.msra.mxu0 %vm4305_vm8, %v4625_v12  ;;  %vm4369_vm11 = vmpackc.low %vm791_vm4, %vm775_vm3  ;;  %vm854_vm3 = vcmp.eq.s32.totalorder %v5274_v39, %v6071_v57  ;;  %vm837_vm8 = vcmp.eq.s32.totalorder %v5276_v40, %v6085_v59 }
 0x1d0   : > { %4370 = vmatpush1.bf16.msk.msra.mxu1 %vm4369_vm11, %v4625_v12  ;;  %vm4307_vm14 = vmpackc.low %vm822_vm7, %vm806_vm6  ;;  %vm856_vm6 = vcmp.eq.s32.totalorder %v5274_v39, %v6079_v58  ;;  %vm839_vm11 = vcmp.eq.s32.totalorder %v5276_v40, %v6091_v60 }
 0x1d1   : > { %4308 = vmatprep.subr.msk.bf16.mxu0 %vm4307_vm14, %v4625_v12  ;;  %vm4371_vm1 = vmpackc.low %vm824_vm10, %vm808_vm9  ;;  %vm853_vm9 = vcmp.eq.s32.totalorder %v5274_v39, %v6085_v59 }
 0x1d2   : > { %4372 = vmatprep.subr.msk.bf16.mxu1 %vm4371_vm1, %v4625_v12  ;;  %vm4309_vm4 = vmpackc.low %vm821_vm13, %vm805_vm12  ;;  %vm855_vm12 = vcmp.eq.s32.totalorder %v5274_v39, %v6091_v60 }
 0x1d3   : > { %4310 = vmatpush1.bf16.msk.msra.mxu0 %vm4309_vm4, %v4625_v12  ;;  %vm4373_vm7 = vmpackc.low %vm823_vm0, %vm807_vm15 }
 0x1d4   : > { %4374 = vmatpush1.bf16.msk.msra.mxu1 %vm4373_vm7, %v4625_v12  ;;  %vm4311_vm10 = vmpackc.low %vm854_vm3, %vm838_vm2 }
 0x1d5   : > { %4312 = vmatprep.subr.msk.bf16.mxu0 %vm4311_vm10, %v4625_v12  ;;  %vm4375_vm13 = vmpackc.low %vm856_vm6, %vm840_vm5 }
 0x1d6   : > { %4376 = vmatprep.subr.msk.bf16.mxu1 %vm4375_vm13, %v4625_v12  ;;  %vm4313_vm14 = vmpackc.low %vm853_vm9, %vm837_vm8 }
 0x1d7   : > { %4314 = vmatpush1.bf16.msk.msra.mxu0 %vm4313_vm14, %v4625_v12  ;;  %vm4377_vm15 = vmpackc.low %vm855_vm12, %vm839_vm11 }
 0x1d8   : > { %4378 = vmatpush1.bf16.msk.msra.mxu1 %vm4377_vm15, %v4625_v12 }
 0x1da   : > { %2488 = vmatmul.mubr.f32.vlgmr.msra.gmra.mrb[24].mxu0 %v6111_v61 }
 0x1db   : > { %2577 = vmatmul.mubr.f32.vlgmr.msra.gmra.mrb[24].mxu1 %v6111_v61  ;;  %2493 = vmatprep.mubr.f32.mxu0 %v6137_v62 }
 0x1dc   : > { %2582 = vmatprep.mubr.f32.mxu1 %v6137_v62 }
 0x1de   : > { %2494 = vmatmul.mubr.f32.gmra.mrb[26].mxu0 %v6151_v63 }
 0x1df   : > { %2583 = vmatmul.mubr.f32.gmra.mrb[26].mxu1 %v6151_v63  ;;  %2499 = vmatprep.mubr.f32.mxu0 %v6174_v0 }
 0x1e0   : > { %2588 = vmatprep.mubr.f32.mxu1 %v6174_v0 }
 0x1e2   : > { %2500 = vmatmul.mubr.f32.gmra.mrb[28].mxu0 %v6197_v1 }
 0x1e3   : > { %2589 = vmatmul.mubr.f32.gmra.mrb[28].mxu1 %v6197_v1  ;;  %2505 = vmatprep.mubr.f32.mxu0 %v6220_v2 }
 0x1e4   : > { %2594 = vmatprep.mubr.f32.mxu1 %v6220_v2 }
 0x1e6   : > { %2506 = vmatmul.mubr.f32.gmra.mrb[30].mxu0 %v6243_v4 }
 0x1e7   : > { %2595 = vmatmul.mubr.f32.gmra.mrb[30].mxu1 %v6243_v4 }
 0x1ed   : > { %v1955_v5 = vpop.f32.mrb[0].mxu0 }
 0x1ee   : > { %2601 = vst [vmem:[%s4779_s16] sm:$0xff] %v1955_v5  ;;  %v2044_v6 = vpop.f32.mrb[0].mxu1  ;;  %v1957_v7 = vpop.f32.mrb[1].mxu0 }
 0x1ef   : > { %2603 = vst [vmem:[%s4779_s16 + $0x10] sm:$0xff] %v2044_v6  ;;  %2602 = vst [vmem:[%s4779_s16 + $0x8] sm:$0xff] %v1957_v7  ;;  %v2046_v8 = vpop.f32.mrb[1].mxu1 }
 0x1f0   : > { %2604 = vst [vmem:[%s4779_s16 + $0x18] sm:$0xff] %v2046_v8 }
 0x1f1   : > { %v1961_v3 = vpop.f32.mrb[2].mxu0 }
 0x1f2   : > { %2617 = vst [vmem:[%s4779_s16 + $0x80] sm:$0xff] %v1961_v3  ;;  %v2050_v9 = vpop.f32.mrb[2].mxu1  ;;  %v1963_v10 = vpop.f32.mrb[3].mxu0 }
 0x1f3   : > { %2619 = vst [vmem:[%s4779_s16 + $0x90] sm:$0xff] %v2050_v9  ;;  %2618 = vst [vmem:[%s4779_s16 + $0x88] sm:$0xff] %v1963_v10  ;;  %v2052_v11 = vpop.f32.mrb[3].mxu1 }
 0x1f4   : > { %2620 = vst [vmem:[%s4779_s16 + $0x98] sm:$0xff] %v2052_v11 }
 0x1f5   : > { %v1967_v12 = vpop.f32.mrb[4].mxu0 }
 0x1f6   : > { %2633 = vst [vmem:[%s4779_s16 + $0x100] sm:$0xff] %v1967_v12  ;;  %v2056_v13 = vpop.f32.mrb[4].mxu1  ;;  %v1969_v14 = vpop.f32.mrb[5].mxu0 }
 0x1f7   : > { %2635 = vst [vmem:[%s4779_s16 + $0x110] sm:$0xff] %v2056_v13  ;;  %2634 = vst [vmem:[%s4779_s16 + $0x108] sm:$0xff] %v1969_v14  ;;  %v2058_v15 = vpop.f32.mrb[5].mxu1 }
 0x1f8   : > { %2636 = vst [vmem:[%s4779_s16 + $0x118] sm:$0xff] %v2058_v15 }
 0x1f9   : > { %v1973_v16 = vpop.f32.mrb[6].mxu0 }
 0x1fa   : > { %2649 = vst [vmem:[%s4779_s16 + $0x180] sm:$0xff] %v1973_v16  ;;  %v2062_v17 = vpop.f32.mrb[6].mxu1  ;;  %v1975_v18 = vpop.f32.mrb[7].mxu0 }
 0x1fb   : > { %2651 = vst [vmem:[%s4779_s16 + $0x190] sm:$0xff] %v2062_v17  ;;  %2650 = vst [vmem:[%s4779_s16 + $0x188] sm:$0xff] %v1975_v18  ;;  %v2064_v19 = vpop.f32.mrb[7].mxu1 }
 0x1fc   : > { %2652 = vst [vmem:[%s4779_s16 + $0x198] sm:$0xff] %v2064_v19 }
 0x22d   : > { %v2133_v20 = vpop.f32.mrb[8].mxu0 }
 0x22e   : > { %2605 = vst [vmem:[%s4779_s16 + $0x20] sm:$0xff] %v2133_v20  ;;  %v2222_v21 = vpop.f32.mrb[8].mxu1  ;;  %v2135_v22 = vpop.f32.mrb[9].mxu0 }
 0x22f   : > { %2607 = vst [vmem:[%s4779_s16 + $0x30] sm:$0xff] %v2222_v21  ;;  %2606 = vst [vmem:[%s4779_s16 + $0x28] sm:$0xff] %v2135_v22  ;;  %v2224_v23 = vpop.f32.mrb[9].mxu1 }
 0x230   : > { %2608 = vst [vmem:[%s4779_s16 + $0x38] sm:$0xff] %v2224_v23 }
 0x231   : > { %v2139_v24 = vpop.f32.mrb[10].mxu0 }
 0x232   : > { %2621 = vst [vmem:[%s4779_s16 + $0xa0] sm:$0xff] %v2139_v24  ;;  %v2228_v25 = vpop.f32.mrb[10].mxu1  ;;  %v2141_v26 = vpop.f32.mrb[11].mxu0 }
 0x233   : > { %2623 = vst [vmem:[%s4779_s16 + $0xb0] sm:$0xff] %v2228_v25  ;;  %2622 = vst [vmem:[%s4779_s16 + $0xa8] sm:$0xff] %v2141_v26  ;;  %v2230_v27 = vpop.f32.mrb[11].mxu1 }
 0x234   : > { %2624 = vst [vmem:[%s4779_s16 + $0xb8] sm:$0xff] %v2230_v27 }
 0x235   : > { %v2145_v28 = vpop.f32.mrb[12].mxu0 }
 0x236   : > { %2637 = vst [vmem:[%s4779_s16 + $0x120] sm:$0xff] %v2145_v28  ;;  %v2234_v29 = vpop.f32.mrb[12].mxu1  ;;  %v2147_v30 = vpop.f32.mrb[13].mxu0 }
 0x237   : > { %2639 = vst [vmem:[%s4779_s16 + $0x130] sm:$0xff] %v2234_v29  ;;  %2638 = vst [vmem:[%s4779_s16 + $0x128] sm:$0xff] %v2147_v30  ;;  %v2236_v31 = vpop.f32.mrb[13].mxu1 }
 0x238   : > { %2640 = vst [vmem:[%s4779_s16 + $0x138] sm:$0xff] %v2236_v31 }
 0x239   : > { %v2151_v32 = vpop.f32.mrb[14].mxu0 }
 0x23a   : > { %2653 = vst [vmem:[%s4779_s16 + $0x1a0] sm:$0xff] %v2151_v32  ;;  %v2240_v33 = vpop.f32.mrb[14].mxu1  ;;  %v2153_v34 = vpop.f32.mrb[15].mxu0 }
 0x23b   : > { %2655 = vst [vmem:[%s4779_s16 + $0x1b0] sm:$0xff] %v2240_v33  ;;  %2654 = vst [vmem:[%s4779_s16 + $0x1a8] sm:$0xff] %v2153_v34  ;;  %v2242_v35 = vpop.f32.mrb[15].mxu1 }
 0x23c   : > { %2656 = vst [vmem:[%s4779_s16 + $0x1b8] sm:$0xff] %v2242_v35 }
 0x26d   : > { %v2311_v36 = vpop.f32.mrb[16].mxu0 }
 0x26e   : > { %2609 = vst [vmem:[%s4779_s16 + $0x40] sm:$0xff] %v2311_v36  ;;  %v2400_v37 = vpop.f32.mrb[16].mxu1  ;;  %v2313_v38 = vpop.f32.mrb[17].mxu0 }
 0x26f   : > { %2611 = vst [vmem:[%s4779_s16 + $0x50] sm:$0xff] %v2400_v37  ;;  %2610 = vst [vmem:[%s4779_s16 + $0x48] sm:$0xff] %v2313_v38  ;;  %v2402_v39 = vpop.f32.mrb[17].mxu1 }
 0x270   : > { %2612 = vst [vmem:[%s4779_s16 + $0x58] sm:$0xff] %v2402_v39 }
 0x271   : > { %v2317_v40 = vpop.f32.mrb[18].mxu0 }
 0x272   : > { %2625 = vst [vmem:[%s4779_s16 + $0xc0] sm:$0xff] %v2317_v40  ;;  %v2406_v41 = vpop.f32.mrb[18].mxu1  ;;  %v2319_v42 = vpop.f32.mrb[19].mxu0 }
 0x273   : > { %2627 = vst [vmem:[%s4779_s16 + $0xd0] sm:$0xff] %v2406_v41  ;;  %2626 = vst [vmem:[%s4779_s16 + $0xc8] sm:$0xff] %v2319_v42  ;;  %v2408_v43 = vpop.f32.mrb[19].mxu1 }
 0x274   : > { %2628 = vst [vmem:[%s4779_s16 + $0xd8] sm:$0xff] %v2408_v43 }
 0x275   : > { %v2323_v44 = vpop.f32.mrb[20].mxu0 }
 0x276   : > { %2641 = vst [vmem:[%s4779_s16 + $0x140] sm:$0xff] %v2323_v44  ;;  %v2412_v45 = vpop.f32.mrb[20].mxu1  ;;  %v2325_v46 = vpop.f32.mrb[21].mxu0 }
 0x277   : > { %2643 = vst [vmem:[%s4779_s16 + $0x150] sm:$0xff] %v2412_v45  ;;  %2642 = vst [vmem:[%s4779_s16 + $0x148] sm:$0xff] %v2325_v46  ;;  %v2414_v47 = vpop.f32.mrb[21].mxu1 }
 0x278   : > { %2644 = vst [vmem:[%s4779_s16 + $0x158] sm:$0xff] %v2414_v47 }
 0x279   : > { %v2329_v48 = vpop.f32.mrb[22].mxu0 }
 0x27a   : > { %2657 = vst [vmem:[%s4779_s16 + $0x1c0] sm:$0xff] %v2329_v48  ;;  %v2418_v49 = vpop.f32.mrb[22].mxu1  ;;  %v2331_v50 = vpop.f32.mrb[23].mxu0 }
 0x27b   : > { %2659 = vst [vmem:[%s4779_s16 + $0x1d0] sm:$0xff] %v2418_v49  ;;  %2658 = vst [vmem:[%s4779_s16 + $0x1c8] sm:$0xff] %v2331_v50  ;;  %v2420_v51 = vpop.f32.mrb[23].mxu1 }
 0x27c   : > { %2660 = vst [vmem:[%s4779_s16 + $0x1d8] sm:$0xff] %v2420_v51 }
 0x2ad   : > { %v2489_v52 = vpop.f32.mrb[24].mxu0 }
 0x2ae   : > { %2613 = vst [vmem:[%s4779_s16 + $0x60] sm:$0xff] %v2489_v52  ;;  %v2578_v53 = vpop.f32.mrb[24].mxu1  ;;  %v2491_v54 = vpop.f32.mrb[25].mxu0 }
 0x2af   : > { %2615 = vst [vmem:[%s4779_s16 + $0x70] sm:$0xff] %v2578_v53  ;;  %2614 = vst [vmem:[%s4779_s16 + $0x68] sm:$0xff] %v2491_v54  ;;  %v2580_v55 = vpop.f32.mrb[25].mxu1 }
 0x2b0   : > { %2616 = vst [vmem:[%s4779_s16 + $0x78] sm:$0xff] %v2580_v55 }
 0x2b1   : > { %v2495_v56 = vpop.f32.mrb[26].mxu0 }
 0x2b2   : > { %2629 = vst [vmem:[%s4779_s16 + $0xe0] sm:$0xff] %v2495_v56  ;;  %v2584_v57 = vpop.f32.mrb[26].mxu1  ;;  %v2497_v58 = vpop.f32.mrb[27].mxu0 }
 0x2b3   : > { %2631 = vst [vmem:[%s4779_s16 + $0xf0] sm:$0xff] %v2584_v57  ;;  %2630 = vst [vmem:[%s4779_s16 + $0xe8] sm:$0xff] %v2497_v58  ;;  %v2586_v59 = vpop.f32.mrb[27].mxu1 }
 0x2b4   : > { %2632 = vst [vmem:[%s4779_s16 + $0xf8] sm:$0xff] %v2586_v59 }
 0x2b5   : > { %v2501_v60 = vpop.f32.mrb[28].mxu0 }
 0x2b6   : > { %2645 = vst [vmem:[%s4779_s16 + $0x160] sm:$0xff] %v2501_v60  ;;  %v2590_v61 = vpop.f32.mrb[28].mxu1  ;;  %v2503_v62 = vpop.f32.mrb[29].mxu0 }
 0x2b7   : > { %2647 = vst [vmem:[%s4779_s16 + $0x170] sm:$0xff] %v2590_v61  ;;  %2646 = vst [vmem:[%s4779_s16 + $0x168] sm:$0xff] %v2503_v62  ;;  %v2592_v63 = vpop.f32.mrb[29].mxu1 }
 0x2b8   : > { %2648 = vst [vmem:[%s4779_s16 + $0x178] sm:$0xff] %v2592_v63 }
 0x2b9   : > { %v2507_v0 = vpop.f32.mrb[30].mxu0 }
 0x2ba   : > { %2661 = vst [vmem:[%s4779_s16 + $0x1e0] sm:$0xff] %v2507_v0  ;;  %v2596_v1 = vpop.f32.mrb[30].mxu1  ;;  %v2509_v2 = vpop.f32.mrb[31].mxu0 }
 0x2bb   : > { %2663 = vst [vmem:[%s4779_s16 + $0x1f0] sm:$0xff] %v2596_v1  ;;  %2662 = vst [vmem:[%s4779_s16 + $0x1e8] sm:$0xff] %v2509_v2  ;;  %v2598_v4 = vpop.f32.mrb[31].mxu1 }
 0x2bc   : > { %2664 = vst [vmem:[%s4779_s16 + $0x1f8] sm:$0xff] %v2598_v4 }
 0x2bd PF: > { %p3860_p11 = scmp.ne.s32.totalorder %s4777_s29, 0 }
 0x2be   : > { %v4626_v5 = vmov (!%p3860_p11), 0.0  }
 0x2bf   : > { %2668 = sbr.rel (%p3860_p11) target bundleno = 735 (0x2df), region = 40  ;;  %2669 = vst [vmem:[%s4779_s16] sm:$0xff] (!%p3860_p11), %v4626_v5  ;;  %2670 = vst [vmem:[%s4779_s16 + $0x8] sm:$0xff] (!%p3860_p11), %v4626_v5 }
 0x2c0   : > { %2671 = vst [vmem:[%s4779_s16 + $0x10] sm:$0xff] (!%p3860_p11), %v4626_v5  ;;  %2672 = vst [vmem:[%s4779_s16 + $0x18] sm:$0xff] (!%p3860_p11), %v4626_v5 }
 0x2c1   : > { %2673 = vst [vmem:[%s4779_s16 + $0x20] sm:$0xff] (!%p3860_p11), %v4626_v5  ;;  %2674 = vst [vmem:[%s4779_s16 + $0x28] sm:$0xff] (!%p3860_p11), %v4626_v5 }
 0x2c2   : > { %2675 = vst [vmem:[%s4779_s16 + $0x30] sm:$0xff] (!%p3860_p11), %v4626_v5  ;;  %2676 = vst [vmem:[%s4779_s16 + $0x38] sm:$0xff] (!%p3860_p11), %v4626_v5 }
 0x2c3   : > { %2677 = vst [vmem:[%s4779_s16 + $0x40] sm:$0xff] (!%p3860_p11), %v4626_v5  ;;  %2678 = vst [vmem:[%s4779_s16 + $0x48] sm:$0xff] (!%p3860_p11), %v4626_v5 }
 0x2c4   : > { %2679 = vst [vmem:[%s4779_s16 + $0x50] sm:$0xff] (!%p3860_p11), %v4626_v5  ;;  %2680 = vst [vmem:[%s4779_s16 + $0x58] sm:$0xff] (!%p3860_p11), %v4626_v5 }
 0x2c5   : > { %2681 = vst [vmem:[%s4779_s16 + $0x60] sm:$0xff] (!%p3860_p11), %v4626_v5  ;;  %2682 = vst [vmem:[%s4779_s16 + $0x68] sm:$0xff] (!%p3860_p11), %v4626_v5 }
 0x2c6   : > { %2683 = vst [vmem:[%s4779_s16 + $0x70] sm:$0xff] %v4626_v5  ;;  %2684 = vst [vmem:[%s4779_s16 + $0x78] sm:$0xff] %v4626_v5 }
 0x2c7   : > { %2685 = vst [vmem:[%s4779_s16 + $0x80] sm:$0xff] %v4626_v5  ;;  %2686 = vst [vmem:[%s4779_s16 + $0x88] sm:$0xff] %v4626_v5 }
 0x2c8   : > { %2687 = vst [vmem:[%s4779_s16 + $0x90] sm:$0xff] %v4626_v5  ;;  %2688 = vst [vmem:[%s4779_s16 + $0x98] sm:$0xff] %v4626_v5 }
 0x2c9   : > { %2689 = vst [vmem:[%s4779_s16 + $0xa0] sm:$0xff] %v4626_v5  ;;  %2690 = vst [vmem:[%s4779_s16 + $0xa8] sm:$0xff] %v4626_v5 }
 0x2ca   : > { %2691 = vst [vmem:[%s4779_s16 + $0xb0] sm:$0xff] %v4626_v5  ;;  %2692 = vst [vmem:[%s4779_s16 + $0xb8] sm:$0xff] %v4626_v5 }
 0x2cb   : > { %2693 = vst [vmem:[%s4779_s16 + $0xc0] sm:$0xff] %v4626_v5  ;;  %2694 = vst [vmem:[%s4779_s16 + $0xc8] sm:$0xff] %v4626_v5 }
 0x2cc   : > { %2695 = vst [vmem:[%s4779_s16 + $0xd0] sm:$0xff] %v4626_v5  ;;  %2696 = vst [vmem:[%s4779_s16 + $0xd8] sm:$0xff] %v4626_v5 }
 0x2cd   : > { %2697 = vst [vmem:[%s4779_s16 + $0xe0] sm:$0xff] %v4626_v5  ;;  %2698 = vst [vmem:[%s4779_s16 + $0xe8] sm:$0xff] %v4626_v5 }
 0x2ce   : > { %2699 = vst [vmem:[%s4779_s16 + $0xf0] sm:$0xff] %v4626_v5  ;;  %2700 = vst [vmem:[%s4779_s16 + $0xf8] sm:$0xff] %v4626_v5 }
 0x2cf   : > { %2701 = vst [vmem:[%s4779_s16 + $0x100] sm:$0xff] %v4626_v5  ;;  %2702 = vst [vmem:[%s4779_s16 + $0x108] sm:$0xff] %v4626_v5 }
 0x2d0   : > { %2703 = vst [vmem:[%s4779_s16 + $0x110] sm:$0xff] %v4626_v5  ;;  %2704 = vst [vmem:[%s4779_s16 + $0x118] sm:$0xff] %v4626_v5 }
 0x2d1   : > { %2705 = vst [vmem:[%s4779_s16 + $0x120] sm:$0xff] %v4626_v5  ;;  %2706 = vst [vmem:[%s4779_s16 + $0x128] sm:$0xff] %v4626_v5 }
 0x2d2   : > { %2707 = vst [vmem:[%s4779_s16 + $0x130] sm:$0xff] %v4626_v5  ;;  %2708 = vst [vmem:[%s4779_s16 + $0x138] sm:$0xff] %v4626_v5 }
 0x2d3   : > { %2709 = vst [vmem:[%s4779_s16 + $0x140] sm:$0xff] %v4626_v5  ;;  %2710 = vst [vmem:[%s4779_s16 + $0x148] sm:$0xff] %v4626_v5 }
 0x2d4   : > { %2711 = vst [vmem:[%s4779_s16 + $0x150] sm:$0xff] %v4626_v5  ;;  %2712 = vst [vmem:[%s4779_s16 + $0x158] sm:$0xff] %v4626_v5 }
 0x2d5   : > { %2713 = vst [vmem:[%s4779_s16 + $0x160] sm:$0xff] %v4626_v5  ;;  %2714 = vst [vmem:[%s4779_s16 + $0x168] sm:$0xff] %v4626_v5 }
 0x2d6   : > { %2715 = vst [vmem:[%s4779_s16 + $0x170] sm:$0xff] %v4626_v5  ;;  %2716 = vst [vmem:[%s4779_s16 + $0x178] sm:$0xff] %v4626_v5 }
 0x2d7   : > { %2717 = vst [vmem:[%s4779_s16 + $0x180] sm:$0xff] %v4626_v5  ;;  %2718 = vst [vmem:[%s4779_s16 + $0x188] sm:$0xff] %v4626_v5 }
 0x2d8   : > { %2719 = vst [vmem:[%s4779_s16 + $0x190] sm:$0xff] %v4626_v5  ;;  %2720 = vst [vmem:[%s4779_s16 + $0x198] sm:$0xff] %v4626_v5 }
 0x2d9   : > { %2721 = vst [vmem:[%s4779_s16 + $0x1a0] sm:$0xff] %v4626_v5  ;;  %2722 = vst [vmem:[%s4779_s16 + $0x1a8] sm:$0xff] %v4626_v5 }
 0x2da   : > { %2723 = vst [vmem:[%s4779_s16 + $0x1b0] sm:$0xff] %v4626_v5  ;;  %2724 = vst [vmem:[%s4779_s16 + $0x1b8] sm:$0xff] %v4626_v5 }
 0x2db   : > { %2725 = vst [vmem:[%s4779_s16 + $0x1c0] sm:$0xff] %v4626_v5  ;;  %2726 = vst [vmem:[%s4779_s16 + $0x1c8] sm:$0xff] %v4626_v5 }
 0x2dc   : > { %2727 = vst [vmem:[%s4779_s16 + $0x1d0] sm:$0xff] %v4626_v5  ;;  %2728 = vst [vmem:[%s4779_s16 + $0x1d8] sm:$0xff] %v4626_v5 }
 0x2dd   : > { %2729 = vst [vmem:[%s4779_s16 + $0x1e0] sm:$0xff] %v4626_v5  ;;  %2730 = vst [vmem:[%s4779_s16 + $0x1e8] sm:$0xff] %v4626_v5 }
 0x2de   : > { %2731 = vst [vmem:[%s4779_s16 + $0x1f0] sm:$0xff] %v4626_v5  ;;  %2732 = vst [vmem:[%s4779_s16 + $0x1f8] sm:$0xff] %v4626_v5 }
 0x2df PF: > { %s3862_s29 = sshll.u32 %s4602_s25, 4  ;;  %s3863_s15 = sshll.u32 %s4606_s26, 9 }
 0x2e0   : > { %s2749_s18 = sshll.u32 %s4779_s16, 4  ;;  %s2746_s19 = sadd.s32 %s3863_s15, %s3862_s29  ;;  %s6705_s18 = int_to_ptr.vmem [resolvable:$true] %s2749_s18 }
 0x2e1   : > { %s3864_s17 = sshll.u32 %s2746_s19, 7  ;;  %s6714_s30 = scalar_lea.sflag [#allocation6], %s153_s20 }
 0x2e2   : > { %s6710_s13 = scalar_lea.hbm %s6769_s3, %s3864_s17  ;;  %s4518_s6 = scalar_lea.vmem %s6705_s18, 8192 }
 0x2e3   : > { %p4519_p13 = scmp.ne.s32.totalorder %s6705_s18, %s4518_s6  ;;  %p6781_p1 = scmp.ne.s32.totalorder %s6774_s8, 0 }
 0x2e4   : > { %s4627_s25 = smov [#allocation7]  }
 0x2e5   : > { %p4520_p3 = pnand %p4519_p13, %p6781_p1  ;;  %s4522_s26 = sshll.u32 %s4627_s25, 4  ;;  %s4523_s26 = int_to_ptr.vmem [resolvable:$false] %s4522_s26 }
 0x2e6   : > { %s4524_s16 = scalar_lea.vmem %s4523_s26, 16384  ;;  %p4525_p8 = scmp.lt.s32.totalorder %s6705_s18, %s4523_s26 }
 0x2e7   : > { %p4521_p5 = pneg %p4520_p3  ;;  %p4526_p9 = scmp.lt.s32.totalorder %s4524_s16, %s4518_s6 }
 0x2e9   : > { %p4527_p10 = por %p4526_p9, %p4525_p8 }
 0x2eb   : > { %p4528_p12 = pnand %p4527_p10, %p4521_p5 }
 0x2ed   : > { %4531 = shalt.err (!%p4528_p12)
}
 0x2ee   : > { %s4532_s20 = scalar_lea.hbm %s6710_s13, 8192  ;;  %s4536_s11 = scalar_lea.hbm %s6769_s3, 131072 }
 0x2ef   : > { %p4533_p0 = scmp.ne.s32.totalorder %s6710_s13, %s4532_s20  ;;  %p4537_p7 = scmp.lt.u32.totalorder %s6710_s13, %s6769_s3 }
 0x2f0   : > { %p4538_p6 = scmp.lt.u32.totalorder %s4536_s11, %s4532_s20  ;;  %p4540_p13 = scmp.lt.u32.totalorder %s4532_s20, %s6710_s13 }
 0x2f1   : > { %p4534_p2 = pnand %p4533_p0, %p6781_p1 }
 0x2f2   : > { %p4539_p11 = por %p4538_p6, %p4537_p7 }
 0x2f3   : > { %p4535_p4 = pneg %p4534_p2 }
 0x2f4   : > { %p4541_p3 = por %p4540_p13, %p4539_p11 }
 0x2f6   : > { %p4542_p5 = pnand %p4541_p3, %p4535_p4 }
 0x2f8   : > { %4545 = shalt.err (!%p4542_p5)
}
 0x2f9   : > { %s4628_s19 = smov 2048   ;;  %s4629_s17 = smov 16384  }
 0x2fa   : > { %s4630_s21 = smov 128  }
 0x2fb   : > { %4383 = dma.vmem_to_hbm [thread:$0]  (%p6781_p1), %s6705_s18, 8192, %s6710_s13, %s6714_s30, %s4628_s19, %s4629_s17, %s4630_s21  }
 0x2fc PF: > { %p4395_p8 = scmp.ge.s32.totalorder %s4618_s0, 2  ;;  %s2764_s12 = sand.u32 1, %s4590_s22  }
 0x2fd   : > { %p6782_p9 = scmp.ne.s32.totalorder %s6775_s9, 0  ;;  %s2765_s6 = scalar_lea.sflag [#allocation6], %s2764_s12 }
 0x2ff   : > { %p4390_p10 = pnand %p4395_p8, %p6782_p9 }
 0x301   : > { %4585 = dma.done.wait (!%p4390_p10), %s2765_s6, 8192  }
 0x302   : > { %4587 = vsyncadd (!%p4390_p10), %s2765_s6, 4294959104  ;;  %s21_s0 = sadd.s32 1, %s4618_s0   ;;  %s6783_s22 = smov %s4594_s23 }
 0x303   : > { %p18_p12 = scmp.ge.s32.totalorder %s21_s0, 18   ;;  %s6784_s23 = smov %s4598_s24 }
 0x304   : > { %s6785_s24 = smov %s4742_s14  ;;  %s6786_s25 = smov %s4610_s27 }
 0x305   : > { %s6787_s26 = smov %s4614_s28  ;;  %s6788_s27 = smov %s6791_s4 }
 0x306   : > { %s6789_s28 = smov %s6795_s5  ;;  %20 = sbr.rel (!%p18_p12) target bundleno = 18 (0x12), region = 73 }
 0x30d   :  { %2770 = vsyncpa [#allocation5], 1 }
 0x30e   :  { %2772 = vsyncpa [#allocation5 + $0x1], 1 }
 0x30f   :  { %2773 = vsyncpa [#allocation6], 1 }
 0x310   :  { %2775 = vsyncpa [#allocation6 + $0x1], 1 }

</bundles_post_ra>
